<compile_context>
chip_gen: v7x
topology: tpu7x:2x2x1
jax: 0.10.0
libtpu: 0.0.40
codegen_flags: <defaults>
</compile_context>

<pallas_src>
import jax
import jax.numpy as jnp
from jax.experimental import pallas as pl
from jax.experimental.pallas import tpu as pltpu

K = 3            # kernel size (module default)
LANES = 128      # TPU lane width
NEG_SLOPE = 0.2  # LeakyReLU slope


def _conv_lrelu_kernel(x_ref, w_ref, b_ref, o_ref, xpad_ref):
    # x_ref:    (1, H, W, Cin)        unpadded NHWC tile, one batch element
    # w_ref:    (9, Cin, CoutT)       weights for this Cout tile, tap index = ky*3 + kx
    # b_ref:    (1, CoutT)            f32 bias for this Cout tile
    # o_ref:    (1, H*(W+2), CoutT)   f32 output; rows laid out as (H, W+2) — the 2 pad
    #                                 columns per row are garbage and cropped by the wrapper
    # xpad_ref: (NR, Cin)             VMEM scratch: flattened zero-padded (H+2, W+2) tile (+slack)
    H, W = x_ref.shape[1], x_ref.shape[2]
    WP = W + 2
    M = H * WP
    cout_t = o_ref.shape[2]

    # Fused zero padding: build the halo'd tile directly in VMEM (no extra HBM round trip).
    xpad_ref[...] = jnp.zeros_like(xpad_ref)
    for y in range(H):
        xpad_ref[pl.ds((y + 1) * WP + 1, W), :] = x_ref[0, y, :, :]

    # 3x3 conv as 9 MXU matmuls over *contiguous* flat slices of the padded tile
    # (no strided slice + reshape relayout copies). f32 accumulation.
    acc = jnp.zeros((M, cout_t), jnp.float32)
    for ky in range(K):
        for kx in range(K):
            tap = xpad_ref[pl.ds(ky * WP + kx, M), :]          # (M, Cin), contiguous
            acc += jnp.dot(tap, w_ref[ky * K + kx],
                           preferred_element_type=jnp.float32)
    # TODO(synk): fold the 9 taps into the contraction dim (im2col, K=9*Cin, single matmul)
    # for better MXU cadence at small Cin; kept as 9 accumulated matmuls here for robustness.

    acc = acc + b_ref[...]                                     # f32 bias
    acc = jnp.where(acc > 0, acc, NEG_SLOPE * acc)             # LeakyReLU(0.2), f32 epilogue
    o_ref[0] = acc.astype(o_ref.dtype)                         # lane-dense (128-wide) store


def conv_leaky_relu_2d(x_nchw, weight_oihw, bias, *, compute_dtype=jnp.float32):
    """Forward pass matching PyTorch ConvLeakyRelu2d with default hyper-params.

    x_nchw:      (N, Cin, H, W)   float32
    weight_oihw: (Cout, Cin, 3, 3)
    bias:        (Cout,)
    compute_dtype: jnp.float32 or jnp.bfloat16 (MXU input dtype; accumulation stays f32)
    returns:     (N, Cout, H, W)  float32
    """
    # TODO(synk): only k=3, stride=1, padding=1, dilation=1, groups=1 (module defaults).
    N, Cin, H, W = x_nchw.shape
    Cout = weight_oihw.shape[0]
    WP = W + 2
    cout_t = LANES                                          # lane-dense output tile
    cout_p = ((Cout + cout_t - 1) // cout_t) * cout_t       # Cout padded to lane multiple
    n_cout_blocks = cout_p // cout_t

    # NCHW adapter only (PyTorch interface). Keep activations NHWC end-to-end in a real
    # pipeline and feed the kernel directly to drop this transpose and the final one.
    x_nhwc = jnp.transpose(x_nchw, (0, 2, 3, 1)).astype(compute_dtype)    # (N, H, W, Cin)

    w = jnp.transpose(weight_oihw, (2, 3, 1, 0))                          # (3, 3, Cin, Cout)
    w = jnp.pad(w, ((0, 0), (0, 0), (0, 0), (0, cout_p - Cout)))
    w = w.reshape(K * K, Cin, cout_p).astype(compute_dtype)               # (9, Cin, CoutP)
    b = jnp.pad(bias, (0, cout_p - Cout)).reshape(1, cout_p).astype(jnp.float32)

    # Flat padded-tile scratch rows: (H+2)*(W+2) plus slack so the last tap slice
    # (offset 2*(W+2)+2, length H*(W+2)) stays in bounds; rounded up to a sublane multiple.
    nr = ((H + 2) * WP + 2 + 7) // 8 * 8

    out_flat = pl.pallas_call(
        _conv_lrelu_kernel,
        out_shape=jax.ShapeDtypeStruct((N, H * WP, cout_p), jnp.float32),
        grid_spec=pltpu.PrefetchScalarGridSpec(
            num_scalar_prefetch=0,
            grid=(N, n_cout_blocks),
            in_specs=[
                pl.BlockSpec((1, H, W, Cin), lambda n, j: (n, 0, 0, 0)),
                pl.BlockSpec((K * K, Cin, cout_t), lambda n, j: (0, 0, j)),
                pl.BlockSpec((1, cout_t), lambda n, j: (0, j)),
            ],
            out_specs=pl.BlockSpec((1, H * WP, cout_t), lambda n, j: (n, 0, j)),
            scratch_shapes=[pltpu.VMEM((nr, Cin), compute_dtype)],
        ),
        compiler_params=pltpu.CompilerParams(
            # Both axes independent -> megacore sharding on v7x; raise scoped VMEM above
            # the 16 MiB v5e default (harmless elsewhere) so larger tiles fit when scaled.
            dimension_semantics=("parallel", "parallel"),
            vmem_limit_bytes=32 * 1024 * 1024,
        ),
    )(x_nhwc, w, b)
    # TODO(synk): for production H/W add an H-row grid axis with a 2-row halo and further
    # Cout tiling — mandatory on v7x (64 MiB VMEM, 2 TensorCores).

    # Crop the 2 garbage pad columns and the Cout lane padding; back to NCHW only to match
    # the PyTorch-style interface (XLA fuses the slice + transpose into one copy).
    out = out_flat.reshape(N, H, WP, cout_p)[:, :, :W, :Cout]
    return jnp.transpose(out, (0, 3, 1, 2))


def _reference(x_nchw, weight_oihw, bias):
    y = jax.lax.conv_general_dilated(
        x_nchw, weight_oihw, window_strides=(1, 1), padding=((1, 1), (1, 1)),
        dimension_numbers=("NCHW", "OIHW", "NCHW"))
    y = y + bias.reshape(1, -1, 1, 1)
    return jnp.where(y > 0, y, NEG_SLOPE * y)


if __name__ == "__main__":
    # Small shapes consistent with the module's forward.
    N, Cin, Cout, H, W = 2, 4, 8, 16, 16

    key = jax.random.PRNGKey(0)
    kx_, kw_, kb_ = jax.random.split(key, 3)

    x = jax.random.normal(kx_, (N, Cin, H, W), dtype=jnp.float32)

    # Deterministic init mimicking nn.Conv2d defaults (uniform(-bound, bound), bound=1/sqrt(fan_in)).
    fan_in = Cin * K * K
    bound = 1.0 / (fan_in ** 0.5)
    weight = jax.random.uniform(kw_, (Cout, Cin, K, K), jnp.float32, -bound, bound)
    bias = jax.random.uniform(kb_, (Cout,), jnp.float32, -bound, bound)

    ref = _reference(x, weight, bias)

    # f32 MXU path: tight check.
    out = jax.block_until_ready(conv_leaky_relu_2d(x, weight, bias))
    assert out.shape == (N, Cout, H, W)
    assert jnp.allclose(out, ref, atol=1e-4, rtol=1e-4)

    # bf16 MXU path (f32 accumulation, f32 epilogue): looser check.
    out_bf16 = jax.block_until_ready(
        conv_leaky_relu_2d(x, weight, bias, compute_dtype=jnp.bfloat16))
    assert out_bf16.shape == (N, Cout, H, W)
    assert jnp.allclose(out_bf16, ref, atol=5e-2, rtol=5e-2)

    print("KERNEL_OK")
</pallas_src>

<mosaic_0001>
module attributes {stable_mosaic.version = 11 : i64} {
  func.func @_conv_lrelu_kernel(%arg0: i32, %arg1: i32, %arg2: memref<1x16x16x4xf32, #tpu.memory_space<vmem>>, %arg3: memref<9x4x128xf32, #tpu.memory_space<vmem>>, %arg4: memref<1x128xf32, #tpu.memory_space<vmem>>, %arg5: memref<1x288x128xf32, #tpu.memory_space<vmem>>, %arg6: memref<328x4xf32, #tpu.memory_space<vmem>>) attributes {dimension_semantics = [#tpu.dimension_semantics<parallel>, #tpu.dimension_semantics<parallel>], iteration_bounds = array<i64: 2, 1>, scalar_prefetch = 0 : i64, scratch_operands = 1 : i64, tpu.core_type = #tpu.core_type<tc>, window_params = [{transform_indices = @transform_0, window_bounds = array<i64: 1, 16, 16, 4>}, {transform_indices = @transform_1, window_bounds = array<i64: 9, 4, 128>}, {transform_indices = @transform_2, window_bounds = array<i64: 1, 128>}, {transform_indices = @transform_3, window_bounds = array<i64: 1, 288, 128>}]} {
    %cst = arith.constant 0.000000e+00 : f32
    %0 = vector.broadcast %cst : f32 to vector<328x4xf32>
    %c0 = arith.constant 0 : index
    %c0_0 = arith.constant 0 : index
    %1 = vector.load %arg6[%c0, %c0_0] : memref<328x4xf32, #tpu.memory_space<vmem>>, vector<328x4xf32>
    tpu.vector_store %arg6[%c0, %c0_0], %0 {strides = array<i32>} : memref<328x4xf32, #tpu.memory_space<vmem>>, vector<328x4xf32>,
    %c0_1 = arith.constant 0 : index
    %c0_2 = arith.constant 0 : index
    %c0_3 = arith.constant 0 : index
    %c0_4 = arith.constant 0 : index
    %2 = vector.load %arg2[%c0_1, %c0_2, %c0_3, %c0_4] : memref<1x16x16x4xf32, #tpu.memory_space<vmem>>, vector<1x1x16x4xf32>
    %3 = vector.shape_cast %2 : vector<1x1x16x4xf32> to vector<16x4xf32>
    %c19 = arith.constant 19 : index
    %c0_5 = arith.constant 0 : index
    %4 = vector.load %arg6[%c19, %c0_5] : memref<328x4xf32, #tpu.memory_space<vmem>>, vector<16x4xf32>
    tpu.vector_store %arg6[%c19, %c0_5], %3 {strides = array<i32>} : memref<328x4xf32, #tpu.memory_space<vmem>>, vector<16x4xf32>,
    %c0_6 = arith.constant 0 : index
    %c1 = arith.constant 1 : index
    %c0_7 = arith.constant 0 : index
    %c0_8 = arith.constant 0 : index
    %5 = vector.load %arg2[%c0_6, %c1, %c0_7, %c0_8] : memref<1x16x16x4xf32, #tpu.memory_space<vmem>>, vector<1x1x16x4xf32>
    %6 = vector.shape_cast %5 : vector<1x1x16x4xf32> to vector<16x4xf32>
    %c37 = arith.constant 37 : index
    %c0_9 = arith.constant 0 : index
    %7 = vector.load %arg6[%c37, %c0_9] : memref<328x4xf32, #tpu.memory_space<vmem>>, vector<16x4xf32>
    tpu.vector_store %arg6[%c37, %c0_9], %6 {strides = array<i32>} : memref<328x4xf32, #tpu.memory_space<vmem>>, vector<16x4xf32>,
    %c0_10 = arith.constant 0 : index
    %c2 = arith.constant 2 : index
    %c0_11 = arith.constant 0 : index
    %c0_12 = arith.constant 0 : index
    %8 = vector.load %arg2[%c0_10, %c2, %c0_11, %c0_12] : memref<1x16x16x4xf32, #tpu.memory_space<vmem>>, vector<1x1x16x4xf32>
    %9 = vector.shape_cast %8 : vector<1x1x16x4xf32> to vector<16x4xf32>
    %c55 = arith.constant 55 : index
    %c0_13 = arith.constant 0 : index
    %10 = vector.load %arg6[%c55, %c0_13] : memref<328x4xf32, #tpu.memory_space<vmem>>, vector<16x4xf32>
    tpu.vector_store %arg6[%c55, %c0_13], %9 {strides = array<i32>} : memref<328x4xf32, #tpu.memory_space<vmem>>, vector<16x4xf32>,
    %c0_14 = arith.constant 0 : index
    %c3 = arith.constant 3 : index
    %c0_15 = arith.constant 0 : index
    %c0_16 = arith.constant 0 : index
    %11 = vector.load %arg2[%c0_14, %c3, %c0_15, %c0_16] : memref<1x16x16x4xf32, #tpu.memory_space<vmem>>, vector<1x1x16x4xf32>
    %12 = vector.shape_cast %11 : vector<1x1x16x4xf32> to vector<16x4xf32>
    %c73 = arith.constant 73 : index
    %c0_17 = arith.constant 0 : index
    %13 = vector.load %arg6[%c73, %c0_17] : memref<328x4xf32, #tpu.memory_space<vmem>>, vector<16x4xf32>
    tpu.vector_store %arg6[%c73, %c0_17], %12 {strides = array<i32>} : memref<328x4xf32, #tpu.memory_space<vmem>>, vector<16x4xf32>,
    %c0_18 = arith.constant 0 : index
    %c4 = arith.constant 4 : index
    %c0_19 = arith.constant 0 : index
    %c0_20 = arith.constant 0 : index
    %14 = vector.load %arg2[%c0_18, %c4, %c0_19, %c0_20] : memref<1x16x16x4xf32, #tpu.memory_space<vmem>>, vector<1x1x16x4xf32>
    %15 = vector.shape_cast %14 : vector<1x1x16x4xf32> to vector<16x4xf32>
    %c91 = arith.constant 91 : index
    %c0_21 = arith.constant 0 : index
    %16 = vector.load %arg6[%c91, %c0_21] : memref<328x4xf32, #tpu.memory_space<vmem>>, vector<16x4xf32>
    tpu.vector_store %arg6[%c91, %c0_21], %15 {strides = array<i32>} : memref<328x4xf32, #tpu.memory_space<vmem>>, vector<16x4xf32>,
    %c0_22 = arith.constant 0 : index
    %c5 = arith.constant 5 : index
    %c0_23 = arith.constant 0 : index
    %c0_24 = arith.constant 0 : index
    %17 = vector.load %arg2[%c0_22, %c5, %c0_23, %c0_24] : memref<1x16x16x4xf32, #tpu.memory_space<vmem>>, vector<1x1x16x4xf32>
    %18 = vector.shape_cast %17 : vector<1x1x16x4xf32> to vector<16x4xf32>
    %c109 = arith.constant 109 : index
    %c0_25 = arith.constant 0 : index
    %19 = vector.load %arg6[%c109, %c0_25] : memref<328x4xf32, #tpu.memory_space<vmem>>, vector<16x4xf32>
    tpu.vector_store %arg6[%c109, %c0_25], %18 {strides = array<i32>} : memref<328x4xf32, #tpu.memory_space<vmem>>, vector<16x4xf32>,
    %c0_26 = arith.constant 0 : index
    %c6 = arith.constant 6 : index
    %c0_27 = arith.constant 0 : index
    %c0_28 = arith.constant 0 : index
    %20 = vector.load %arg2[%c0_26, %c6, %c0_27, %c0_28] : memref<1x16x16x4xf32, #tpu.memory_space<vmem>>, vector<1x1x16x4xf32>
    %21 = vector.shape_cast %20 : vector<1x1x16x4xf32> to vector<16x4xf32>
    %c127 = arith.constant 127 : index
    %c0_29 = arith.constant 0 : index
    %22 = vector.load %arg6[%c127, %c0_29] : memref<328x4xf32, #tpu.memory_space<vmem>>, vector<16x4xf32>
    tpu.vector_store %arg6[%c127, %c0_29], %21 {strides = array<i32>} : memref<328x4xf32, #tpu.memory_space<vmem>>, vector<16x4xf32>,
    %c0_30 = arith.constant 0 : index
    %c7 = arith.constant 7 : index
    %c0_31 = arith.constant 0 : index
    %c0_32 = arith.constant 0 : index
    %23 = vector.load %arg2[%c0_30, %c7, %c0_31, %c0_32] : memref<1x16x16x4xf32, #tpu.memory_space<vmem>>, vector<1x1x16x4xf32>
    %24 = vector.shape_cast %23 : vector<1x1x16x4xf32> to vector<16x4xf32>
    %c145 = arith.constant 145 : index
    %c0_33 = arith.constant 0 : index
    %25 = vector.load %arg6[%c145, %c0_33] : memref<328x4xf32, #tpu.memory_space<vmem>>, vector<16x4xf32>
    tpu.vector_store %arg6[%c145, %c0_33], %24 {strides = array<i32>} : memref<328x4xf32, #tpu.memory_space<vmem>>, vector<16x4xf32>,
    %c0_34 = arith.constant 0 : index
    %c8 = arith.constant 8 : index
    %c0_35 = arith.constant 0 : index
    %c0_36 = arith.constant 0 : index
    %26 = vector.load %arg2[%c0_34, %c8, %c0_35, %c0_36] : memref<1x16x16x4xf32, #tpu.memory_space<vmem>>, vector<1x1x16x4xf32>
    %27 = vector.shape_cast %26 : vector<1x1x16x4xf32> to vector<16x4xf32>
    %c163 = arith.constant 163 : index
    %c0_37 = arith.constant 0 : index
    %28 = vector.load %arg6[%c163, %c0_37] : memref<328x4xf32, #tpu.memory_space<vmem>>, vector<16x4xf32>
    tpu.vector_store %arg6[%c163, %c0_37], %27 {strides = array<i32>} : memref<328x4xf32, #tpu.memory_space<vmem>>, vector<16x4xf32>,
    %c0_38 = arith.constant 0 : index
    %c9 = arith.constant 9 : index
    %c0_39 = arith.constant 0 : index
    %c0_40 = arith.constant 0 : index
    %29 = vector.load %arg2[%c0_38, %c9, %c0_39, %c0_40] : memref<1x16x16x4xf32, #tpu.memory_space<vmem>>, vector<1x1x16x4xf32>
    %30 = vector.shape_cast %29 : vector<1x1x16x4xf32> to vector<16x4xf32>
    %c181 = arith.constant 181 : index
    %c0_41 = arith.constant 0 : index
    %31 = vector.load %arg6[%c181, %c0_41] : memref<328x4xf32, #tpu.memory_space<vmem>>, vector<16x4xf32>
    tpu.vector_store %arg6[%c181, %c0_41], %30 {strides = array<i32>} : memref<328x4xf32, #tpu.memory_space<vmem>>, vector<16x4xf32>,
    %c0_42 = arith.constant 0 : index
    %c10 = arith.constant 10 : index
    %c0_43 = arith.constant 0 : index
    %c0_44 = arith.constant 0 : index
    %32 = vector.load %arg2[%c0_42, %c10, %c0_43, %c0_44] : memref<1x16x16x4xf32, #tpu.memory_space<vmem>>, vector<1x1x16x4xf32>
    %33 = vector.shape_cast %32 : vector<1x1x16x4xf32> to vector<16x4xf32>
    %c199 = arith.constant 199 : index
    %c0_45 = arith.constant 0 : index
    %34 = vector.load %arg6[%c199, %c0_45] : memref<328x4xf32, #tpu.memory_space<vmem>>, vector<16x4xf32>
    tpu.vector_store %arg6[%c199, %c0_45], %33 {strides = array<i32>} : memref<328x4xf32, #tpu.memory_space<vmem>>, vector<16x4xf32>,
    %c0_46 = arith.constant 0 : index
    %c11 = arith.constant 11 : index
    %c0_47 = arith.constant 0 : index
    %c0_48 = arith.constant 0 : index
    %35 = vector.load %arg2[%c0_46, %c11, %c0_47, %c0_48] : memref<1x16x16x4xf32, #tpu.memory_space<vmem>>, vector<1x1x16x4xf32>
    %36 = vector.shape_cast %35 : vector<1x1x16x4xf32> to vector<16x4xf32>
    %c217 = arith.constant 217 : index
    %c0_49 = arith.constant 0 : index
    %37 = vector.load %arg6[%c217, %c0_49] : memref<328x4xf32, #tpu.memory_space<vmem>>, vector<16x4xf32>
    tpu.vector_store %arg6[%c217, %c0_49], %36 {strides = array<i32>} : memref<328x4xf32, #tpu.memory_space<vmem>>, vector<16x4xf32>,
    %c0_50 = arith.constant 0 : index
    %c12 = arith.constant 12 : index
    %c0_51 = arith.constant 0 : index
    %c0_52 = arith.constant 0 : index
    %38 = vector.load %arg2[%c0_50, %c12, %c0_51, %c0_52] : memref<1x16x16x4xf32, #tpu.memory_space<vmem>>, vector<1x1x16x4xf32>
    %39 = vector.shape_cast %38 : vector<1x1x16x4xf32> to vector<16x4xf32>
    %c235 = arith.constant 235 : index
    %c0_53 = arith.constant 0 : index
    %40 = vector.load %arg6[%c235, %c0_53] : memref<328x4xf32, #tpu.memory_space<vmem>>, vector<16x4xf32>
    tpu.vector_store %arg6[%c235, %c0_53], %39 {strides = array<i32>} : memref<328x4xf32, #tpu.memory_space<vmem>>, vector<16x4xf32>,
    %c0_54 = arith.constant 0 : index
    %c13 = arith.constant 13 : index
    %c0_55 = arith.constant 0 : index
    %c0_56 = arith.constant 0 : index
    %41 = vector.load %arg2[%c0_54, %c13, %c0_55, %c0_56] : memref<1x16x16x4xf32, #tpu.memory_space<vmem>>, vector<1x1x16x4xf32>
    %42 = vector.shape_cast %41 : vector<1x1x16x4xf32> to vector<16x4xf32>
    %c253 = arith.constant 253 : index
    %c0_57 = arith.constant 0 : index
    %43 = vector.load %arg6[%c253, %c0_57] : memref<328x4xf32, #tpu.memory_space<vmem>>, vector<16x4xf32>
    tpu.vector_store %arg6[%c253, %c0_57], %42 {strides = array<i32>} : memref<328x4xf32, #tpu.memory_space<vmem>>, vector<16x4xf32>,
    %c0_58 = arith.constant 0 : index
    %c14 = arith.constant 14 : index
    %c0_59 = arith.constant 0 : index
    %c0_60 = arith.constant 0 : index
    %44 = vector.load %arg2[%c0_58, %c14, %c0_59, %c0_60] : memref<1x16x16x4xf32, #tpu.memory_space<vmem>>, vector<1x1x16x4xf32>
    %45 = vector.shape_cast %44 : vector<1x1x16x4xf32> to vector<16x4xf32>
    %c271 = arith.constant 271 : index
    %c0_61 = arith.constant 0 : index
    %46 = vector.load %arg6[%c271, %c0_61] : memref<328x4xf32, #tpu.memory_space<vmem>>, vector<16x4xf32>
    tpu.vector_store %arg6[%c271, %c0_61], %45 {strides = array<i32>} : memref<328x4xf32, #tpu.memory_space<vmem>>, vector<16x4xf32>,
    %c0_62 = arith.constant 0 : index
    %c15 = arith.constant 15 : index
    %c0_63 = arith.constant 0 : index
    %c0_64 = arith.constant 0 : index
    %47 = vector.load %arg2[%c0_62, %c15, %c0_63, %c0_64] : memref<1x16x16x4xf32, #tpu.memory_space<vmem>>, vector<1x1x16x4xf32>
    %48 = vector.shape_cast %47 : vector<1x1x16x4xf32> to vector<16x4xf32>
    %c289 = arith.constant 289 : index
    %c0_65 = arith.constant 0 : index
    %49 = vector.load %arg6[%c289, %c0_65] : memref<328x4xf32, #tpu.memory_space<vmem>>, vector<16x4xf32>
    tpu.vector_store %arg6[%c289, %c0_65], %48 {strides = array<i32>} : memref<328x4xf32, #tpu.memory_space<vmem>>, vector<16x4xf32>,
    %cst_66 = arith.constant 0.000000e+00 : f32
    %50 = vector.broadcast %cst_66 : f32 to vector<288x128xf32>
    %c0_67 = arith.constant 0 : index
    %c0_68 = arith.constant 0 : index
    %51 = vector.load %arg6[%c0_67, %c0_68] : memref<328x4xf32, #tpu.memory_space<vmem>>, vector<288x4xf32>
    %c0_69 = arith.constant 0 : index
    %c0_70 = arith.constant 0 : index
    %c0_71 = arith.constant 0 : index
    %52 = vector.load %arg3[%c0_69, %c0_70, %c0_71] : memref<9x4x128xf32, #tpu.memory_space<vmem>>, vector<1x4x128xf32>
    %53 = vector.shape_cast %52 : vector<1x4x128xf32> to vector<4x128xf32>
    %cst_72 = arith.constant dense<0.000000e+00> : vector<288x128xf32>
    %54 = tpu.matmul %51, %53, %cst_72 {dimension_numbers = #tpu.dot_dimension_numbers<[1], [0], [0], [1], [0, 0, 1, 1], [], []>} : vector<288x4xf32>, vector<4x128xf32>, vector<288x128xf32> -> vector<288x128xf32>
    %55 = arith.addf %50, %54 : vector<288x128xf32>
    %c1_73 = arith.constant 1 : index
    %c0_74 = arith.constant 0 : index
    %56 = vector.load %arg6[%c1_73, %c0_74] : memref<328x4xf32, #tpu.memory_space<vmem>>, vector<288x4xf32>
    %c1_75 = arith.constant 1 : index
    %c0_76 = arith.constant 0 : index
    %c0_77 = arith.constant 0 : index
    %57 = vector.load %arg3[%c1_75, %c0_76, %c0_77] : memref<9x4x128xf32, #tpu.memory_space<vmem>>, vector<1x4x128xf32>
    %58 = vector.shape_cast %57 : vector<1x4x128xf32> to vector<4x128xf32>
    %cst_78 = arith.constant dense<0.000000e+00> : vector<288x128xf32>
    %59 = tpu.matmul %56, %58, %cst_78 {dimension_numbers = #tpu.dot_dimension_numbers<[1], [0], [0], [1], [0, 0, 1, 1], [], []>} : vector<288x4xf32>, vector<4x128xf32>, vector<288x128xf32> -> vector<288x128xf32>
    %60 = arith.addf %55, %59 : vector<288x128xf32>
    %c2_79 = arith.constant 2 : index
    %c0_80 = arith.constant 0 : index
    %61 = vector.load %arg6[%c2_79, %c0_80] : memref<328x4xf32, #tpu.memory_space<vmem>>, vector<288x4xf32>
    %c2_81 = arith.constant 2 : index
    %c0_82 = arith.constant 0 : index
    %c0_83 = arith.constant 0 : index
    %62 = vector.load %arg3[%c2_81, %c0_82, %c0_83] : memref<9x4x128xf32, #tpu.memory_space<vmem>>, vector<1x4x128xf32>
    %63 = vector.shape_cast %62 : vector<1x4x128xf32> to vector<4x128xf32>
    %cst_84 = arith.constant dense<0.000000e+00> : vector<288x128xf32>
    %64 = tpu.matmul %61, %63, %cst_84 {dimension_numbers = #tpu.dot_dimension_numbers<[1], [0], [0], [1], [0, 0, 1, 1], [], []>} : vector<288x4xf32>, vector<4x128xf32>, vector<288x128xf32> -> vector<288x128xf32>
    %65 = arith.addf %60, %64 : vector<288x128xf32>
    %c18 = arith.constant 18 : index
    %c0_85 = arith.constant 0 : index
    %66 = vector.load %arg6[%c18, %c0_85] : memref<328x4xf32, #tpu.memory_space<vmem>>, vector<288x4xf32>
    %c3_86 = arith.constant 3 : index
    %c0_87 = arith.constant 0 : index
    %c0_88 = arith.constant 0 : index
    %67 = vector.load %arg3[%c3_86, %c0_87, %c0_88] : memref<9x4x128xf32, #tpu.memory_space<vmem>>, vector<1x4x128xf32>
    %68 = vector.shape_cast %67 : vector<1x4x128xf32> to vector<4x128xf32>
    %cst_89 = arith.constant dense<0.000000e+00> : vector<288x128xf32>
    %69 = tpu.matmul %66, %68, %cst_89 {dimension_numbers = #tpu.dot_dimension_numbers<[1], [0], [0], [1], [0, 0, 1, 1], [], []>} : vector<288x4xf32>, vector<4x128xf32>, vector<288x128xf32> -> vector<288x128xf32>
    %70 = arith.addf %65, %69 : vector<288x128xf32>
    %c19_90 = arith.constant 19 : index
    %c0_91 = arith.constant 0 : index
    %71 = vector.load %arg6[%c19_90, %c0_91] : memref<328x4xf32, #tpu.memory_space<vmem>>, vector<288x4xf32>
    %c4_92 = arith.constant 4 : index
    %c0_93 = arith.constant 0 : index
    %c0_94 = arith.constant 0 : index
    %72 = vector.load %arg3[%c4_92, %c0_93, %c0_94] : memref<9x4x128xf32, #tpu.memory_space<vmem>>, vector<1x4x128xf32>
    %73 = vector.shape_cast %72 : vector<1x4x128xf32> to vector<4x128xf32>
    %cst_95 = arith.constant dense<0.000000e+00> : vector<288x128xf32>
    %74 = tpu.matmul %71, %73, %cst_95 {dimension_numbers = #tpu.dot_dimension_numbers<[1], [0], [0], [1], [0, 0, 1, 1], [], []>} : vector<288x4xf32>, vector<4x128xf32>, vector<288x128xf32> -> vector<288x128xf32>
    %75 = arith.addf %70, %74 : vector<288x128xf32>
    %c20 = arith.constant 20 : index
    %c0_96 = arith.constant 0 : index
    %76 = vector.load %arg6[%c20, %c0_96] : memref<328x4xf32, #tpu.memory_space<vmem>>, vector<288x4xf32>
    %c5_97 = arith.constant 5 : index
    %c0_98 = arith.constant 0 : index
    %c0_99 = arith.constant 0 : index
    %77 = vector.load %arg3[%c5_97, %c0_98, %c0_99] : memref<9x4x128xf32, #tpu.memory_space<vmem>>, vector<1x4x128xf32>
    %78 = vector.shape_cast %77 : vector<1x4x128xf32> to vector<4x128xf32>
    %cst_100 = arith.constant dense<0.000000e+00> : vector<288x128xf32>
    %79 = tpu.matmul %76, %78, %cst_100 {dimension_numbers = #tpu.dot_dimension_numbers<[1], [0], [0], [1], [0, 0, 1, 1], [], []>} : vector<288x4xf32>, vector<4x128xf32>, vector<288x128xf32> -> vector<288x128xf32>
    %80 = arith.addf %75, %79 : vector<288x128xf32>
    %c36 = arith.constant 36 : index
    %c0_101 = arith.constant 0 : index
    %81 = vector.load %arg6[%c36, %c0_101] : memref<328x4xf32, #tpu.memory_space<vmem>>, vector<288x4xf32>
    %c6_102 = arith.constant 6 : index
    %c0_103 = arith.constant 0 : index
    %c0_104 = arith.constant 0 : index
    %82 = vector.load %arg3[%c6_102, %c0_103, %c0_104] : memref<9x4x128xf32, #tpu.memory_space<vmem>>, vector<1x4x128xf32>
    %83 = vector.shape_cast %82 : vector<1x4x128xf32> to vector<4x128xf32>
    %cst_105 = arith.constant dense<0.000000e+00> : vector<288x128xf32>
    %84 = tpu.matmul %81, %83, %cst_105 {dimension_numbers = #tpu.dot_dimension_numbers<[1], [0], [0], [1], [0, 0, 1, 1], [], []>} : vector<288x4xf32>, vector<4x128xf32>, vector<288x128xf32> -> vector<288x128xf32>
    %85 = arith.addf %80, %84 : vector<288x128xf32>
    %c37_106 = arith.constant 37 : index
    %c0_107 = arith.constant 0 : index
    %86 = vector.load %arg6[%c37_106, %c0_107] : memref<328x4xf32, #tpu.memory_space<vmem>>, vector<288x4xf32>
    %c7_108 = arith.constant 7 : index
    %c0_109 = arith.constant 0 : index
    %c0_110 = arith.constant 0 : index
    %87 = vector.load %arg3[%c7_108, %c0_109, %c0_110] : memref<9x4x128xf32, #tpu.memory_space<vmem>>, vector<1x4x128xf32>
    %88 = vector.shape_cast %87 : vector<1x4x128xf32> to vector<4x128xf32>
    %cst_111 = arith.constant dense<0.000000e+00> : vector<288x128xf32>
    %89 = tpu.matmul %86, %88, %cst_111 {dimension_numbers = #tpu.dot_dimension_numbers<[1], [0], [0], [1], [0, 0, 1, 1], [], []>} : vector<288x4xf32>, vector<4x128xf32>, vector<288x128xf32> -> vector<288x128xf32>
    %90 = arith.addf %85, %89 : vector<288x128xf32>
    %c38 = arith.constant 38 : index
    %c0_112 = arith.constant 0 : index
    %91 = vector.load %arg6[%c38, %c0_112] : memref<328x4xf32, #tpu.memory_space<vmem>>, vector<288x4xf32>
    %c8_113 = arith.constant 8 : index
    %c0_114 = arith.constant 0 : index
    %c0_115 = arith.constant 0 : index
    %92 = vector.load %arg3[%c8_113, %c0_114, %c0_115] : memref<9x4x128xf32, #tpu.memory_space<vmem>>, vector<1x4x128xf32>
    %93 = vector.shape_cast %92 : vector<1x4x128xf32> to vector<4x128xf32>
    %cst_116 = arith.constant dense<0.000000e+00> : vector<288x128xf32>
    %94 = tpu.matmul %91, %93, %cst_116 {dimension_numbers = #tpu.dot_dimension_numbers<[1], [0], [0], [1], [0, 0, 1, 1], [], []>} : vector<288x4xf32>, vector<4x128xf32>, vector<288x128xf32> -> vector<288x128xf32>
    %95 = arith.addf %90, %94 : vector<288x128xf32>
    %c0_117 = arith.constant 0 : index
    %c0_118 = arith.constant 0 : index
    %96 = vector.load %arg4[%c0_117, %c0_118] : memref<1x128xf32, #tpu.memory_space<vmem>>, vector<1x128xf32>
    %97 = vector.broadcast %96 : vector<1x128xf32> to vector<288x128xf32>
    %98 = arith.addf %95, %97 : vector<288x128xf32>
    %cst_119 = arith.constant 0.000000e+00 : f32
    %99 = vector.broadcast %cst_119 : f32 to vector<288x128xf32>
    %100 = arith.cmpf ogt, %98, %99 : vector<288x128xf32>
    %cst_120 = arith.constant 2.000000e-01 : f32
    %101 = vector.broadcast %cst_120 : f32 to vector<288x128xf32>
    %102 = arith.mulf %101, %98 : vector<288x128xf32>
    %103 = arith.select %100, %98, %102 : vector<288x128xi1>, vector<288x128xf32>
    %c0_121 = arith.constant 0 : index
    %c0_122 = arith.constant 0 : index
    %c0_123 = arith.constant 0 : index
    %104 = vector.load %arg5[%c0_121, %c0_122, %c0_123] : memref<1x288x128xf32, #tpu.memory_space<vmem>>, vector<1x288x128xf32>
    %105 = vector.shape_cast %104 : vector<1x288x128xf32> to vector<288x128xf32>
    %106 = vector.shape_cast %103 : vector<288x128xf32> to vector<1x288x128xf32>
    tpu.vector_store %arg5[%c0_121, %c0_122, %c0_123], %106 {strides = array<i32>} : memref<1x288x128xf32, #tpu.memory_space<vmem>>, vector<1x288x128xf32>,
    return
  }
  func.func @transform_0(%arg0: i32, %arg1: i32) -> (i32, i32, i32, i32) {
    %c0_i32 = arith.constant 0 : i32
    %c0_i32_0 = arith.constant 0 : i32
    %c0_i32_1 = arith.constant 0 : i32
    %c0_i32_2 = arith.constant 0 : i32
    return %arg0, %c0_i32, %c0_i32_0, %c0_i32_1 : i32, i32, i32, i32
  }
  func.func @transform_1(%arg0: i32, %arg1: i32) -> (i32, i32, i32) {
    %c0_i32 = arith.constant 0 : i32
    %c0_i32_0 = arith.constant 0 : i32
    %c0_i32_1 = arith.constant 0 : i32
    return %c0_i32, %c0_i32_0, %arg1 : i32, i32, i32
  }
  func.func @transform_2(%arg0: i32, %arg1: i32) -> (i32, i32) {
    %c0_i32 = arith.constant 0 : i32
    %c0_i32_0 = arith.constant 0 : i32
    return %c0_i32, %arg1 : i32, i32
  }
  func.func @transform_3(%arg0: i32, %arg1: i32) -> (i32, i32, i32) {
    %c0_i32 = arith.constant 0 : i32
    %c0_i32_0 = arith.constant 0 : i32
    return %arg0, %c0_i32, %arg1 : i32, i32, i32
  }
}

</mosaic_0001>

<bundles_post_ra>
// kernel: tpu_custom_call.1
= control target key start
LH: loop header
LB: loop body
LE: loop exit
PB: predicated region body
PF: predicated region fallthrough
CT: control target
= control target key end

     0   :  { %8 = vsyncpa [#allocation4], 0  ;;  %s7121_s0 = inlined_call_operand.vmem [shape: f32[2,16,16,4], index: 0, kind: input, shape index: {}]   ;;  %s7122_s1 = inlined_call_operand.vmem [shape: f32[9,4,128], index: 1, kind: input, shape index: {}]   ;;  %s7123_s2 = inlined_call_operand.vmem [shape: f32[1,128], index: 2, kind: input, shape index: {}]   ;;  %s7124_s3 = inlined_call_operand.hbm [shape: f32[2,288,128], index: 3, kind: output, shape index: {}]  }
   0x1   :  { %10 = vsyncpa [#allocation4 + $0x1], 0  ;;  %s6110_s12 = smov 0   ;;  %s6112_s13 = smov 0  }
   0x2   :  { %s6114_s14 = smov 0   ;;  %s6116_s15 = smov 0  }
   0x3   :  { %s6118_s16 = smov 0   ;;  %s6120_s17 = smov 0  }
   0x4 LB: > { %s4434_s18 = sadd.s32 4294967295, %s6084_s17   ;;  %s4435_s19 = sadd.s32 4294967294, %s6084_s17   ;;  %s6084_s17 = sphi %s6120_s17, %s16_s17   ;;  %s6080_s16 = sphi %s6118_s16, %s7131_s16   ;;  %s6076_s15 = sphi %s6116_s15, %s7130_s15   ;;  %s6072_s14 = sphi %s6114_s14, %s7129_s14   ;;  %s6068_s13 = sphi %s6112_s13, %s7128_s13   ;;  %s6064_s12 = sphi %s6110_s12, %s7127_s12  }
   0x5   : > { %s28_s20 = sadd.s32 1, %s6080_s16  ;;  %s115_s21 = sadd.s32 1, %s6072_s14 }
   0x6   : > { %p30_p0 = scmp.ge.s32.totalorder %s28_s20, 2  ;;  %p125_p1 = scmp.ne.s32.totalorder %s6072_s14, %s6068_s13 }
   0x7   : > { %p126_p2 = scmp.eq.s32.totalorder %s4434_s18, 1  ;;  %p131_p3 = scmp.ne.s32.totalorder %s6068_s13, %s6064_s12 }
   0x8   : > { %s7133_s20 = smov (%p30_p0, %s28_s20), 0  ;;  %p132_p5 = scmp.eq.s32.totalorder %s4435_s19, 1 }
   0x9   : > { %p6150_p4 = por %p126_p2, %p125_p1  ;;  %s110_s23 = ssub.s32 %s6080_s16, %s7133_s20 }
   0xa   : > { %p4440_p6 = scmp.ge.s32.totalorder %s6084_s17, 1  ;;  %p113_p7 = scmp.eq.s32.totalorder %s110_s23, 0 }
   0xb   : > { %p6157_p8 = por %p132_p5, %p131_p3  ;;  %p171_p9 = scmp.lt.s32.totalorder %s6084_s17, 3 }
   0xc   : > { %s6163_s25 = scalar_select %p113_p7, %s6072_s14, %s115_s21  }
   0xd   : > { %p172_p10 = pnand %p4440_p6, %p171_p9 }
   0xe   : > { %v4473_v0 = vld [vmem:[%s7122_s1 + $0x4] sm:$0xf] (!%p172_p10)  ;;  %vm518_vm0 = vcmask (!%p172_p10), 1043456   ;;  %vm214_vm1 = vcmask (!%p172_p10), 31744   ;;  %p202_p11 = scmp.lt.s32.totalorder (!%p172_p10), %s6076_s15, 1  ;;  %v6086_v1 = vmov (!%p172_p10), 0.0  }
   0xf   : > { %175 = sbr.rel (%p172_p10) target bundleno = 600 (0x258), region = 32  ;;  %5152 = vmatprep.subr.msk.mxu1 (!%p172_p10), %vm518_vm0, %v4473_v0  ;;  %215 = vst.msk [vmem:[#allocation2] sm:$0xff] (!%p172_p10), %vm214_vm1, %v6086_v1  ;;  %216 = vst.msk [vmem:[#allocation2 + $0x8] sm:$0xff] (!%p172_p10), %vm214_vm1, %v6086_v1  ;;  %v6214_v2 = vld [vmem:[%s7122_s1 + $0x10] sm:$0xf] (!%p172_p10)  ;;  %s199_s5 = sand.u32 (!%p172_p10), 1, %s6068_s13  }
  0x10   : > { %217 = vst.msk [vmem:[#allocation2 + $0x10] sm:$0xff] (!%p172_p10), %vm214_vm1, %v6086_v1  ;;  %218 = vst.msk [vmem:[#allocation2 + $0x18] sm:$0xff] (!%p172_p10), %vm214_vm1, %v6086_v1  ;;  %v371_v3 = vld [vmem:[%s7122_s1] sm:$0xf] (!%p172_p10)  ;;  %v6222_v4 = vld [vmem:[%s7122_s1 + $0x14] sm:$0xf] (!%p172_p10)  ;;  %5153 = vmatpush3.msk.msra.mxu1 (!%p172_p10), %vm518_vm0, %v4473_v0  ;;  %5376 = vmatprep.subr.msk.mxu0 (!%p172_p10), %vm518_vm0, %v6214_v2 }
  0x11   : > { %219 = vst.msk [vmem:[#allocation2 + $0x20] sm:$0xff] (!%p172_p10), %vm214_vm1, %v6086_v1  ;;  %220 = vst.msk [vmem:[#allocation2 + $0x28] sm:$0xff] (!%p172_p10), %vm214_vm1, %v6086_v1  ;;  %5377 = vmatpush3.msk.msra.mxu0 (!%p172_p10), %vm518_vm0, %v6214_v2  ;;  %5208 = vmatprep.subr.msk.mxu1 (!%p172_p10), %vm518_vm0, %v371_v3  ;;  %v6252_v11 = vld [vmem:[%s7122_s1 + $0x8] sm:$0xf] (!%p172_p10)  ;;  %v6289_v27 = vld [vmem:[%s7122_s1 + $0x18] sm:$0xf] (!%p172_p10) }
  0x12   : > { %221 = vst.msk [vmem:[#allocation2 + $0x30] sm:$0xff] (!%p172_p10), %vm214_vm1, %v6086_v1  ;;  %222 = vst.msk [vmem:[#allocation2 + $0x38] sm:$0xff] (!%p172_p10), %vm214_vm1, %v6086_v1  ;;  %5432 = vmatprep.subr.msk.mxu0 (!%p172_p10), %vm518_vm0, %v6222_v4  ;;  %s5947_s10 = smul.u32 (!%p172_p10), 4608, %s6076_s15  ;;  %s7075_s21 = scalar_lea.sflag (!%p172_p10), [#allocation4], %s199_s5 }
  0x13   : > { %223 = vst.msk [vmem:[#allocation2 + $0x40] sm:$0xff] (!%p172_p10), %vm214_vm1, %v6086_v1  ;;  %224 = vst.msk [vmem:[#allocation2 + $0x48] sm:$0xff] (!%p172_p10), %vm214_vm1, %v6086_v1  ;;  %s6087_s26 = smov (!%p172_p10), [#allocation3]  }
  0x14   : > { %225 = vst.msk [vmem:[#allocation2 + $0x50] sm:$0xff] (!%p172_p10), %vm214_vm1, %v6086_v1  ;;  %226 = vst.msk [vmem:[#allocation2 + $0x58] sm:$0xff] (!%p172_p10), %vm214_vm1, %v6086_v1  ;;  %s6010_s27 = sshll.u32 (!%p172_p10), %s6087_s26, 4  ;;  %s6011_s27 = int_to_ptr.vmem [resolvable:$false] %s6010_s27 }
  0x15   : > { %227 = vst.msk [vmem:[#allocation2 + $0x60] sm:$0xff] (!%p172_p10), %vm214_vm1, %v6086_v1  ;;  %228 = vst.msk [vmem:[#allocation2 + $0x68] sm:$0xff] (!%p172_p10), %vm214_vm1, %v6086_v1  ;;  %s6012_s28 = scalar_lea.vmem (!%p172_p10), %s6011_s27, 9216 }
  0x16   : > { %229 = vst.msk [vmem:[#allocation2 + $0x70] sm:$0xff] %vm214_vm1, %v6086_v1  ;;  %230 = vst.msk [vmem:[#allocation2 + $0x78] sm:$0xff] %vm214_vm1, %v6086_v1  ;;  %s203_s7 = scalar_select %p202_p11, %s6076_s15, 1  ;;  %v372_v12 = vld [vmem:[#allocation2 + $0x1] sm:$0xff] }
  0x17   : > { %231 = vst.msk [vmem:[#allocation2 + $0x80] sm:$0xff] %vm214_vm1, %v6086_v1  ;;  %232 = vst.msk [vmem:[#allocation2 + $0x88] sm:$0xff] %vm214_vm1, %v6086_v1  ;;  %v373_v13 = vld [vmem:[#allocation2 + $0x9] sm:$0xff]  ;;  %5154 = vmatprep.mubr.msk.f32.mxu1 %vm214_vm1, %v372_v12  ;;  %s7067_s15 = scalar_lea.hbm %s7124_s3, %s5947_s10 }
  0x18   : > { %233 = vst.msk [vmem:[#allocation2 + $0x90] sm:$0xff] %vm214_vm1, %v6086_v1  ;;  %234 = vst.msk [vmem:[#allocation2 + $0x98] sm:$0xff] %vm214_vm1, %v6086_v1  ;;  %s4818_s8 = sshll.u32 %s203_s7, 8  ;;  %5155 = vmatmul.mubr.msk.f32.vlgmr.msra.gmra.mrb[0].mxu1 %vm214_vm1, %v373_v13 }
  0x19   : > { %235 = vst.msk [vmem:[#allocation2 + $0xa0] sm:$0xff] %vm214_vm1, %v6086_v1  ;;  %236 = vst.msk [vmem:[#allocation2 + $0xa8] sm:$0xff] %vm214_vm1, %v6086_v1  ;;  %s6238_s11 = scalar_lea.vmem %s7121_s0, %s4818_s8  ;;  %5209 = vmatpush3.msk.msra.mxu1 %vm518_vm0, %v371_v3  ;;  %s5946_s8 = smul.u32 288, %s199_s5 }
  0x1a   : > { %237 = vst.msk [vmem:[#allocation2 + $0xb0] sm:$0xff] %vm214_vm1, %v6086_v1  ;;  %238 = vst.msk [vmem:[#allocation2 + $0xb8] sm:$0xff] %vm214_vm1, %v6086_v1  ;;  %v256_v5 = vld [vmem:[%s6238_s11] sm:$0xff]  ;;  %v257_v6 = vld [vmem:[%s6238_s11 + $0x8] sm:$0xff]  ;;  %5264 = vmatprep.subr.msk.mxu1 %vm518_vm0, %v6252_v11 }
  0x1b   : > { %239 = vst.msk [vmem:[#allocation2 + $0xc0] sm:$0xff] %vm214_vm1, %v6086_v1  ;;  %240 = vst.msk [vmem:[#allocation2 + $0xc8] sm:$0xff] %vm214_vm1, %v6086_v1  ;;  %v4443_v7 = vld [vmem:[%s6238_s11 + $0x10] sm:$0xff]  ;;  %v4444_v8 = vld [vmem:[%s6238_s11 + $0x18] sm:$0xff]  ;;  %s6983_s9 = scalar_lea.vmem [#allocation3], %s5946_s8 }
  0x1c   : > { %241 = vst.msk [vmem:[#allocation2 + $0xd0] sm:$0xff] %vm214_vm1, %v6086_v1  ;;  %242 = vst.msk [vmem:[#allocation2 + $0xd8] sm:$0xff] %vm214_vm1, %v6086_v1  ;;  %v4445_v9 = vld [vmem:[%s6238_s11 + $0x20] sm:$0xff]  ;;  %v4446_v10 = vld [vmem:[%s6238_s11 + $0x28] sm:$0xff] }
  0x1d   : > { %243 = vst.msk [vmem:[#allocation2 + $0xe0] sm:$0xff] %vm214_vm1, %v6086_v1  ;;  %244 = vst.msk [vmem:[#allocation2 + $0xe8] sm:$0xff] %vm214_vm1, %v6086_v1  ;;  %v4447_v14 = vld [vmem:[%s6238_s11 + $0x30] sm:$0xff]  ;;  %v4448_v15 = vld [vmem:[%s6238_s11 + $0x38] sm:$0xff] }
  0x1e   : > { %245 = vst.msk [vmem:[#allocation2 + $0xf0] sm:$0xff] %vm214_vm1, %v6086_v1  ;;  %246 = vst.msk [vmem:[#allocation2 + $0xf8] sm:$0xff] %vm214_vm1, %v6086_v1  ;;  %v4449_v16 = vld [vmem:[%s6238_s11 + $0x40] sm:$0xff]  ;;  %v4450_v17 = vld [vmem:[%s6238_s11 + $0x48] sm:$0xff] }
  0x1f   : > { %247 = vst.msk [vmem:[#allocation2 + $0x100] sm:$0xff] %vm214_vm1, %v6086_v1  ;;  %248 = vst.msk [vmem:[#allocation2 + $0x108] sm:$0xff] %vm214_vm1, %v6086_v1  ;;  %v4451_v18 = vld [vmem:[%s6238_s11 + $0x50] sm:$0xff]  ;;  %v4452_v19 = vld [vmem:[%s6238_s11 + $0x58] sm:$0xff] }
  0x20   : > { %249 = vst.msk [vmem:[#allocation2 + $0x110] sm:$0xff] %vm214_vm1, %v6086_v1  ;;  %250 = vst.msk [vmem:[#allocation2 + $0x118] sm:$0xff] %vm214_vm1, %v6086_v1  ;;  %v4453_v20 = vld [vmem:[%s6238_s11 + $0x60] sm:$0xff]  ;;  %v4454_v21 = vld [vmem:[%s6238_s11 + $0x68] sm:$0xff] }
  0x21   : > { %251 = vst.msk [vmem:[#allocation2 + $0x120] sm:$0xff] %vm214_vm1, %v6086_v1  ;;  %252 = vst.msk [vmem:[#allocation2 + $0x128] sm:$0xff] %vm214_vm1, %v6086_v1  ;;  %v4455_v22 = vld [vmem:[%s6238_s11 + $0x70] sm:$0xff]  ;;  %v4456_v23 = vld [vmem:[%s6238_s11 + $0x78] sm:$0xff] }
  0x22   : > { %253 = vst.msk [vmem:[#allocation2 + $0x130] sm:$0xff] %vm214_vm1, %v6086_v1  ;;  %254 = vst.msk [vmem:[#allocation2 + $0x138] sm:$0xff] %vm214_vm1, %v6086_v1  ;;  %v4457_v24 = vld [vmem:[%s6238_s11 + $0x80] sm:$0xff]  ;;  %v4458_v25 = vld [vmem:[%s6238_s11 + $0x88] sm:$0xff] }
  0x23   : > { %255 = vst.msk [vmem:[#allocation2 + $0x140] sm:$0xff] %vm214_vm1, %v6086_v1  ;;  %258 = vst.msk [vmem:[#allocation2 + $0x13] sm:$0xff] %vm214_vm1, %v256_v5  ;;  %v4459_v26 = vld [vmem:[%s6238_s11 + $0x90] sm:$0xff]  ;;  %v4460_v28 = vld [vmem:[%s6238_s11 + $0x98] sm:$0xff] }
  0x24   : > { %259 = vst.msk [vmem:[#allocation2 + $0x1b] sm:$0xff] %vm214_vm1, %v257_v6  ;;  %263 = vst.msk [vmem:[#allocation2 + $0x25] sm:$0xff] %vm214_vm1, %v4443_v7  ;;  %v4461_v29 = vld [vmem:[%s6238_s11 + $0xa0] sm:$0xff]  ;;  %v4462_v30 = vld [vmem:[%s6238_s11 + $0xa8] sm:$0xff] }
  0x25   : > { %264 = vst.msk [vmem:[#allocation2 + $0x2d] sm:$0xff] %vm214_vm1, %v4444_v8  ;;  %268 = vst.msk [vmem:[#allocation2 + $0x37] sm:$0xff] %vm214_vm1, %v4445_v9  ;;  %v4463_v53 = vld [vmem:[%s6238_s11 + $0xb0] sm:$0xff]  ;;  %v4464_v54 = vld [vmem:[%s6238_s11 + $0xb8] sm:$0xff] }
  0x26   : > { %269 = vst.msk [vmem:[#allocation2 + $0x3f] sm:$0xff] %vm214_vm1, %v4446_v10  ;;  %273 = vst.msk [vmem:[#allocation2 + $0x49] sm:$0xff] %vm214_vm1, %v4447_v14  ;;  %v4465_v56 = vld [vmem:[%s6238_s11 + $0xc0] sm:$0xff]  ;;  %v4466_v57 = vld [vmem:[%s6238_s11 + $0xc8] sm:$0xff] }
  0x27   : > { %274 = vst.msk [vmem:[#allocation2 + $0x51] sm:$0xff] %vm214_vm1, %v4448_v15  ;;  %278 = vst.msk [vmem:[#allocation2 + $0x5b] sm:$0xff] %vm214_vm1, %v4449_v16  ;;  %v4467_v60 = vld [vmem:[%s6238_s11 + $0xd0] sm:$0xff]  ;;  %v4468_v62 = vld [vmem:[%s6238_s11 + $0xd8] sm:$0xff] }
  0x28   : > { %279 = vst.msk [vmem:[#allocation2 + $0x63] sm:$0xff] %vm214_vm1, %v4450_v17  ;;  %283 = vst.msk [vmem:[#allocation2 + $0x6d] sm:$0xff] %vm214_vm1, %v4451_v18  ;;  %v4469_v63 = vld [vmem:[%s6238_s11 + $0xe0] sm:$0xff]  ;;  %v4470_v0 = vld [vmem:[%s6238_s11 + $0xe8] sm:$0xff] }
  0x29   : > { %284 = vst.msk [vmem:[#allocation2 + $0x75] sm:$0xff] %vm214_vm1, %v4452_v19  ;;  %288 = vst.msk [vmem:[#allocation2 + $0x7f] sm:$0xff] %vm214_vm1, %v4453_v20  ;;  %v6360_v18 = vld [vmem:[%s7122_s1 + $0x1c] sm:$0xf]  ;;  %v4471_v20 = vld [vmem:[%s6238_s11 + $0xf0] sm:$0xff] }
  0x2a   : > { %289 = vst.msk [vmem:[#allocation2 + $0x87] sm:$0xff] %vm214_vm1, %v4454_v21  ;;  %293 = vst.msk [vmem:[#allocation2 + $0x91] sm:$0xff] %vm214_vm1, %v4455_v22  ;;  %v374_v31 = vld [vmem:[#allocation2 + $0x11] sm:$0xff] }
  0x2b   : > { %294 = vst.msk [vmem:[#allocation2 + $0x99] sm:$0xff] %vm214_vm1, %v4456_v23  ;;  %298 = vst.msk [vmem:[#allocation2 + $0xa3] sm:$0xff] %vm214_vm1, %v4457_v24  ;;  %v1983_v32 = vld [vmem:[#allocation2 + $0x13] sm:$0xff]  ;;  %5157 = vmatprep.mubr.msk.f32.mxu1 %vm214_vm1, %v374_v31  ;;  %v1984_v34 = vld [vmem:[#allocation2 + $0x1b] sm:$0xff] }
  0x2c   : > { %299 = vst.msk [vmem:[#allocation2 + $0xab] sm:$0xff] %vm214_vm1, %v4458_v25  ;;  %303 = vst.msk [vmem:[#allocation2 + $0xb5] sm:$0xff] %vm214_vm1, %v4459_v26  ;;  %v375_v33 = vld [vmem:[#allocation2 + $0x19] sm:$0xff]  ;;  %5378 = vmatprep.mubr.msk.f32.mxu0 %vm214_vm1, %v1983_v32  ;;  %v376_v35 = vld [vmem:[#allocation2 + $0x21] sm:$0xff] }
  0x2d   : > { %304 = vst.msk [vmem:[#allocation2 + $0xbd] sm:$0xff] %vm214_vm1, %v4460_v28  ;;  %308 = vst.msk [vmem:[#allocation2 + $0xc7] sm:$0xff] %vm214_vm1, %v4461_v29  ;;  %v1985_v36 = vld [vmem:[#allocation2 + $0x23] sm:$0xff]  ;;  %5158 = vmatmul.mubr.msk.f32.gmra.mrb[2].mxu1 %vm214_vm1, %v375_v33  ;;  %5379 = vmatmul.mubr.msk.f32.vlgmr.msra.gmra.mrb[0].mxu0 %vm214_vm1, %v1984_v34  ;;  %v1986_v38 = vld [vmem:[#allocation2 + $0x2b] sm:$0xff] }
  0x2e   : > { %309 = vst.msk [vmem:[#allocation2 + $0xcf] sm:$0xff] %vm214_vm1, %v4462_v30  ;;  %5433 = vmatpush3.msk.msra.mxu0 %vm518_vm0, %v6222_v4  ;;  %5160 = vmatprep.mubr.msk.f32.mxu1 %vm214_vm1, %v376_v35  ;;  %v377_v37 = vld [vmem:[#allocation2 + $0x29] sm:$0xff]  ;;  %v378_v39 = vld [vmem:[#allocation2 + $0x31] sm:$0xff]  ;;  %v379_v41 = vld [vmem:[#allocation2 + $0x39] sm:$0xff] }
  0x2f   : > { %5381 = vmatprep.mubr.msk.f32.mxu0 %vm214_vm1, %v1985_v36  ;;  %v1987_v40 = vld [vmem:[#allocation2 + $0x33] sm:$0xff]  ;;  %5488 = vmatprep.subr.msk.mxu0 %vm518_vm0, %v6289_v27  ;;  %v1988_v42 = vld [vmem:[#allocation2 + $0x3b] sm:$0xff]  ;;  %v1989_v44 = vld [vmem:[#allocation2 + $0x43] sm:$0xff]  ;;  %313 = vst.msk [vmem:[#allocation2 + $0xd9] sm:$0xff] %vm214_vm1, %v4463_v53 }
  0x30   : > { %v380_v43 = vld [vmem:[#allocation2 + $0x41] sm:$0xff]  ;;  %v381_v45 = vld [vmem:[#allocation2 + $0x49] sm:$0xff]  ;;  %v382_v47 = vld [vmem:[#allocation2 + $0x51] sm:$0xff]  ;;  %314 = vst.msk [vmem:[#allocation2 + $0xe1] sm:$0xff] %vm214_vm1, %v4464_v54 }
  0x31   : > { %5161 = vmatmul.mubr.msk.f32.gmra.mrb[4].mxu1 %vm214_vm1, %v377_v37  ;;  %5382 = vmatmul.mubr.msk.f32.gmra.mrb[2].mxu0 %vm214_vm1, %v1986_v38  ;;  %v1990_v46 = vld [vmem:[#allocation2 + $0x4b] sm:$0xff]  ;;  %v1991_v48 = vld [vmem:[#allocation2 + $0x53] sm:$0xff]  ;;  %v1992_v50 = vld [vmem:[#allocation2 + $0x5b] sm:$0xff]  ;;  %318 = vst.msk [vmem:[#allocation2 + $0xeb] sm:$0xff] %vm214_vm1, %v4465_v56 }
  0x32   : > { %5163 = vmatprep.mubr.msk.f32.mxu1 %vm214_vm1, %v378_v39  ;;  %5384 = vmatprep.mubr.msk.f32.mxu0 %vm214_vm1, %v1987_v40  ;;  %v383_v49 = vld [vmem:[#allocation2 + $0x59] sm:$0xff]  ;;  %v384_v51 = vld [vmem:[#allocation2 + $0x61] sm:$0xff]  ;;  %v385_v55 = vld [vmem:[#allocation2 + $0x69] sm:$0xff]  ;;  %319 = vst.msk [vmem:[#allocation2 + $0xf3] sm:$0xff] %vm214_vm1, %v4466_v57 }
  0x33   : > { %v1993_v52 = vld [vmem:[#allocation2 + $0x63] sm:$0xff]  ;;  %v1994_v58 = vld [vmem:[#allocation2 + $0x6b] sm:$0xff]  ;;  %v1995_v61 = vld [vmem:[#allocation2 + $0x73] sm:$0xff]  ;;  %323 = vst.msk [vmem:[#allocation2 + $0xfd] sm:$0xff] %vm214_vm1, %v4467_v60 }
  0x34   : > { %v386_v59 = vld [vmem:[#allocation2 + $0x71] sm:$0xff]  ;;  %324 = vst.msk [vmem:[#allocation2 + $0x105] sm:$0xff] %vm214_vm1, %v4468_v62  ;;  %328 = vst.msk [vmem:[#allocation2 + $0x10f] sm:$0xff] %vm214_vm1, %v4469_v63  ;;  %v387_v1 = vld [vmem:[#allocation2 + $0x79] sm:$0xff] }
  0x35   : > { %5164 = vmatmul.mubr.msk.f32.gmra.mrb[6].mxu1 %vm214_vm1, %v379_v41  ;;  %5385 = vmatmul.mubr.msk.f32.gmra.mrb[4].mxu0 %vm214_vm1, %v1988_v42  ;;  %329 = vst.msk [vmem:[#allocation2 + $0x117] sm:$0xff] %vm214_vm1, %v4470_v0  ;;  %v1996_v3 = vld [vmem:[#allocation2 + $0x7b] sm:$0xff]  ;;  %v1997_v5 = vld [vmem:[#allocation2 + $0x83] sm:$0xff]  ;;  %v1998_v7 = vld [vmem:[#allocation2 + $0x8b] sm:$0xff] }
  0x36   : > { %5166 = vmatprep.mubr.msk.f32.mxu1 %vm214_vm1, %v380_v43  ;;  %5387 = vmatprep.mubr.msk.f32.mxu0 %vm214_vm1, %v1989_v44  ;;  %v388_v4 = vld [vmem:[#allocation2 + $0x81] sm:$0xff]  ;;  %v389_v6 = vld [vmem:[#allocation2 + $0x89] sm:$0xff]  ;;  %v390_v8 = vld [vmem:[#allocation2 + $0x91] sm:$0xff]  ;;  %333 = vst.msk [vmem:[#allocation2 + $0x121] sm:$0xff] %vm214_vm1, %v4471_v20 }
  0x37   : > { %v1999_v9 = vld [vmem:[#allocation2 + $0x93] sm:$0xff]  ;;  %v2000_v12 = vld [vmem:[#allocation2 + $0x9b] sm:$0xff]  ;;  %v393_v15 = vld [vmem:[#allocation2 + $0xa9] sm:$0xff] }
  0x38   : > { %v391_v10 = vld [vmem:[#allocation2 + $0x99] sm:$0xff]  ;;  %v392_v13 = vld [vmem:[#allocation2 + $0xa1] sm:$0xff]  ;;  %v394_v17 = vld [vmem:[#allocation2 + $0xb1] sm:$0xff] }
  0x39   : > { %5167 = vmatmul.mubr.msk.f32.gmra.mrb[8].mxu1 %vm214_vm1, %v381_v45  ;;  %5388 = vmatmul.mubr.msk.f32.gmra.mrb[6].mxu0 %vm214_vm1, %v1990_v46  ;;  %v2413_v14 = vld [vmem:[#allocation2 + $0x14] sm:$0xff]  ;;  %v2414_v16 = vld [vmem:[#allocation2 + $0x1c] sm:$0xff]  ;;  %v6362_v19 = vld [vmem:[#allocation2 + $0x24] sm:$0xff] }
  0x3a   : > { %5169 = vmatprep.mubr.msk.f32.mxu1 %vm214_vm1, %v382_v47  ;;  %5390 = vmatprep.mubr.msk.f32.mxu0 %vm214_vm1, %v1991_v48  ;;  %v4472_v21 = vld [vmem:[%s6238_s11 + $0xf8] sm:$0xff]  ;;  %v6373_v23 = vld [vmem:[#allocation2 + $0x2c] sm:$0xff]  ;;  %v396_v24 = vld [vmem:[#allocation2 + $0xc1] sm:$0xff]  ;;  %s4335_s11 = sshll.u32 %s6983_s9, 4  ;;  %s7069_s11 = int_to_ptr.vmem [resolvable:$true] %s4335_s11 }
  0x3b   : > { %334 = vst.msk [vmem:[#allocation2 + $0x129] sm:$0xff] %vm214_vm1, %v4472_v21  ;;  %v395_v22 = vld [vmem:[#allocation2 + $0xb9] sm:$0xff]  ;;  %v397_v26 = vld [vmem:[#allocation2 + $0xc9] sm:$0xff]  ;;  %v398_v28 = vld [vmem:[#allocation2 + $0xd1] sm:$0xff]  ;;  %s6006_s23 = scalar_lea.vmem %s7069_s11, 4608  ;;  %p6013_p1 = scmp.lt.s32.totalorder %s7069_s11, %s6011_s27 }
  0x3c   : > { %v6377_v25 = vld [vmem:[#allocation2 + $0x34] sm:$0xff]  ;;  %v6389_v29 = vld [vmem:[#allocation2 + $0x44] sm:$0xff]  ;;  %v6397_v31 = vld [vmem:[#allocation2 + $0x4c] sm:$0xff]  ;;  %p6007_p12 = scmp.ne.s32.totalorder %s7069_s11, %s6006_s23  ;;  %p6014_p2 = scmp.lt.s32.totalorder %s6012_s28, %s6006_s23 }
  0x3d   : > { %5170 = vmatmul.mubr.msk.f32.gmra.mrb[10].mxu1 %vm214_vm1, %v383_v49  ;;  %5391 = vmatmul.mubr.msk.f32.gmra.mrb[8].mxu0 %vm214_vm1, %v1992_v50  ;;  %v399_v30 = vld [vmem:[#allocation2 + $0xd9] sm:$0xff]  ;;  %v400_v32 = vld [vmem:[#allocation2 + $0xe1] sm:$0xff]  ;;  %v401_v34 = vld [vmem:[#allocation2 + $0xe9] sm:$0xff] }
  0x3e   : > { %5172 = vmatprep.mubr.msk.f32.mxu1 %vm214_vm1, %v384_v51  ;;  %5393 = vmatprep.mubr.msk.f32.mxu0 %vm214_vm1, %v1993_v52  ;;  %v6399_v33 = vld [vmem:[#allocation2 + $0x54] sm:$0xff]  ;;  %v6407_v35 = vld [vmem:[#allocation2 + $0x5c] sm:$0xff]  ;;  %v6409_v37 = vld [vmem:[#allocation2 + $0x64] sm:$0xff]  ;;  %p6008_p13 = pnand %p6007_p12, %p6150_p4  ;;  %p6015_p3 = por %p6014_p2, %p6013_p1 }
  0x3f   : > { %v402_v36 = vld [vmem:[#allocation2 + $0xf1] sm:$0xff]  ;;  %v403_v38 = vld [vmem:[#allocation2 + $0xf9] sm:$0xff]  ;;  %v404_v40 = vld [vmem:[#allocation2 + $0x101] sm:$0xff] }
  0x40   : > { %v6417_v39 = vld [vmem:[#allocation2 + $0x6c] sm:$0xff]  ;;  %v6419_v41 = vld [vmem:[#allocation2 + $0x74] sm:$0xff]  ;;  %v6427_v43 = vld [vmem:[#allocation2 + $0x7c] sm:$0xff]  ;;  %p6009_p0 = pneg %p6008_p13 }
  0x41   : > { %5173 = vmatmul.mubr.msk.f32.gmra.mrb[12].mxu1 %vm214_vm1, %v385_v55  ;;  %5394 = vmatmul.mubr.msk.f32.gmra.mrb[10].mxu0 %vm214_vm1, %v1994_v58  ;;  %v405_v42 = vld [vmem:[#allocation2 + $0x109] sm:$0xff]  ;;  %v406_v44 = vld [vmem:[#allocation2 + $0x111] sm:$0xff]  ;;  %v407_v46 = vld [vmem:[#allocation2 + $0x119] sm:$0xff] }
  0x42   : > { %5175 = vmatprep.mubr.msk.f32.mxu1 %vm214_vm1, %v386_v59  ;;  %5396 = vmatprep.mubr.msk.f32.mxu0 %vm214_vm1, %v1995_v61  ;;  %v6429_v45 = vld [vmem:[#allocation2 + $0x84] sm:$0xff]  ;;  %v6437_v47 = vld [vmem:[#allocation2 + $0x8c] sm:$0xff]  ;;  %v6439_v49 = vld [vmem:[#allocation2 + $0x94] sm:$0xff]  ;;  %p6016_p5 = pnand %p6015_p3, %p6009_p0 }
  0x43   : > { %v335_v48 = vld [vmem:[#allocation2] sm:$0xff]  ;;  %v336_v50 = vld [vmem:[#allocation2 + $0x8] sm:$0xff]  ;;  %v337_v52 = vld [vmem:[#allocation2 + $0x10] sm:$0xff] }
  0x44   : > { %v6447_v51 = vld [vmem:[#allocation2 + $0x9c] sm:$0xff]  ;;  %v6449_v53 = vld [vmem:[#allocation2 + $0xa4] sm:$0xff]  ;;  %v6457_v54 = vld [vmem:[%s7122_s1 + $0xc] sm:$0xf] }
  0x45   : > { %5176 = vmatmul.mubr.msk.f32.gmra.mrb[14].mxu1 %vm214_vm1, %v387_v1  ;;  %5397 = vmatmul.mubr.msk.f32.gmra.mrb[12].mxu0 %vm214_vm1, %v1996_v3  ;;  %v338_v55 = vld [vmem:[#allocation2 + $0x18] sm:$0xff]  ;;  %v6462_v56 = vld [vmem:[#allocation2 + $0xac] sm:$0xff]  ;;  %v339_v57 = vld [vmem:[#allocation2 + $0x20] sm:$0xff] }
  0x46   : > { %5178 = vmatprep.mubr.msk.f32.mxu1 %vm214_vm1, %v388_v4  ;;  %5399 = vmatprep.mubr.msk.f32.mxu0 %vm214_vm1, %v1997_v5  ;;  %v6466_v58 = vld [vmem:[#allocation2 + $0xb4] sm:$0xff]  ;;  %v340_v59 = vld [vmem:[#allocation2 + $0x28] sm:$0xff]  ;;  %v6476_v60 = vld [vmem:[#allocation2 + $0xbc] sm:$0xff] }
  0x47   : > { %v6478_v61 = vld [vmem:[#allocation2 + $0xc4] sm:$0xff]  ;;  %v342_v62 = vld [vmem:[#allocation2 + $0x38] sm:$0xff]  ;;  %v6486_v63 = vld [vmem:[#allocation2 + $0xcc] sm:$0xff] }
  0x48   : > { %v343_v0 = vld [vmem:[#allocation2 + $0x40] sm:$0xff]  ;;  %v6488_v1 = vld [vmem:[#allocation2 + $0xd4] sm:$0xff]  ;;  %v344_v3 = vld [vmem:[#allocation2 + $0x48] sm:$0xff] }
  0x49   : > { %5179 = vmatmul.mubr.msk.f32.gmra.mrb[16].mxu1 %vm214_vm1, %v389_v6  ;;  %5400 = vmatmul.mubr.msk.f32.gmra.mrb[14].mxu0 %vm214_vm1, %v1998_v7  ;;  %v6496_v4 = vld [vmem:[#allocation2 + $0xdc] sm:$0xff]  ;;  %v345_v5 = vld [vmem:[#allocation2 + $0x50] sm:$0xff]  ;;  %v6498_v6 = vld [vmem:[#allocation2 + $0xe4] sm:$0xff] }
  0x4a   : > { %5181 = vmatprep.mubr.msk.f32.mxu1 %vm214_vm1, %v390_v8  ;;  %5402 = vmatprep.mubr.msk.f32.mxu0 %vm214_vm1, %v1999_v9  ;;  %v346_v7 = vld [vmem:[#allocation2 + $0x58] sm:$0xff]  ;;  %v6506_v8 = vld [vmem:[#allocation2 + $0xec] sm:$0xff]  ;;  %v347_v9 = vld [vmem:[#allocation2 + $0x60] sm:$0xff] }
  0x4b   : > { %v351_v20 = vld [vmem:[#allocation2 + $0x80] sm:$0xff]  ;;  %v6528_v21 = vld [vmem:[#allocation2 + $0x114] sm:$0xff] }
  0x4d   : > { %5182 = vmatmul.mubr.msk.f32.gmra.mrb[18].mxu1 %vm214_vm1, %v391_v10  ;;  %5403 = vmatmul.mubr.msk.f32.gmra.mrb[16].mxu0 %vm214_vm1, %v2000_v12  ;;  %v6508_v10 = vld [vmem:[#allocation2 + $0xf4] sm:$0xff]  ;;  %v348_v12 = vld [vmem:[#allocation2 + $0x68] sm:$0xff] }
  0x4e   : > { %5184 = vmatprep.mubr.msk.f32.mxu1 %vm214_vm1, %v392_v13  ;;  %5434 = vmatprep.mubr.msk.f32.mxu0 %vm214_vm1, %v2413_v14  ;;  %v6516_v13 = vld [vmem:[#allocation2 + $0xfc] sm:$0xff]  ;;  %v349_v14 = vld [vmem:[#allocation2 + $0x70] sm:$0xff] }
  0x51   : > { %5185 = vmatmul.mubr.msk.f32.gmra.mrb[20].mxu1 %vm214_vm1, %v393_v15  ;;  %5435 = vmatmul.mubr.msk.f32.vlgmr.msra.gmra.mrb[0].mxu0 %vm214_vm1, %v2414_v16  ;;  %v6518_v15 = vld [vmem:[#allocation2 + $0x104] sm:$0xff]  ;;  %v350_v16 = vld [vmem:[#allocation2 + $0x78] sm:$0xff] }
  0x52   : > { %5489 = vmatpush3.msk.msra.mxu0 %vm518_vm0, %v6289_v27  ;;  %5187 = vmatprep.mubr.msk.f32.mxu1 %vm214_vm1, %v394_v17  ;;  %v6387_v27 = vld [vmem:[#allocation2 + $0x3c] sm:$0xff]  ;;  %v6526_v17 = vld [vmem:[#allocation2 + $0x10c] sm:$0xff] }
  0x53   : > { %5437 = vmatprep.mubr.msk.f32.mxu0 %vm214_vm1, %v6362_v19  ;;  %5544 = vmatprep.subr.msk.mxu0 %vm518_vm0, %v6360_v18 }
  0x55   : > { %5188 = vmatmul.mubr.msk.f32.gmra.mrb[22].mxu1 %vm214_vm1, %v395_v22  ;;  %5438 = vmatmul.mubr.msk.f32.gmra.mrb[2].mxu0 %vm214_vm1, %v6373_v23  ;;  %v352_v22 = vld [vmem:[#allocation2 + $0x88] sm:$0xff] }
  0x56   : > { %5190 = vmatprep.mubr.msk.f32.mxu1 %vm214_vm1, %v396_v24  ;;  %5440 = vmatprep.mubr.msk.f32.mxu0 %vm214_vm1, %v6377_v25  ;;  %v6536_v24 = vld [vmem:[#allocation2 + $0x11c] sm:$0xff] }
  0x59   : > { %5191 = vmatmul.mubr.msk.f32.gmra.mrb[24].mxu1 %vm214_vm1, %v397_v26  ;;  %5441 = vmatmul.mubr.msk.f32.gmra.mrb[4].mxu0 %vm214_vm1, %v6387_v27  ;;  %v353_v26 = vld [vmem:[#allocation2 + $0x90] sm:$0xff] }
  0x5a   : > { %5193 = vmatprep.mubr.msk.f32.mxu1 %vm214_vm1, %v398_v28  ;;  %5443 = vmatprep.mubr.msk.f32.mxu0 %vm214_vm1, %v6389_v29  ;;  %v6538_v28 = vld [vmem:[#allocation2 + $0x124] sm:$0xff] }
  0x5d   : > { %5194 = vmatmul.mubr.msk.f32.gmra.mrb[26].mxu1 %vm214_vm1, %v399_v30  ;;  %5444 = vmatmul.mubr.msk.f32.gmra.mrb[6].mxu0 %vm214_vm1, %v6397_v31  ;;  %v354_v30 = vld [vmem:[#allocation2 + $0x98] sm:$0xff] }
  0x5e   : > { %5196 = vmatprep.mubr.msk.f32.mxu1 %vm214_vm1, %v400_v32  ;;  %5446 = vmatprep.mubr.msk.f32.mxu0 %vm214_vm1, %v6399_v33  ;;  %v6546_v32 = vld [vmem:[#allocation2 + $0x12c] sm:$0xff] }
  0x61   : > { %5197 = vmatmul.mubr.msk.f32.gmra.mrb[28].mxu1 %vm214_vm1, %v401_v34  ;;  %5447 = vmatmul.mubr.msk.f32.gmra.mrb[8].mxu0 %vm214_vm1, %v6407_v35  ;;  %v355_v34 = vld [vmem:[#allocation2 + $0xa0] sm:$0xff] }
  0x62   : > { %5199 = vmatprep.mubr.msk.f32.mxu1 %vm214_vm1, %v402_v36  ;;  %5449 = vmatprep.mubr.msk.f32.mxu0 %vm214_vm1, %v6409_v37  ;;  %v356_v36 = vld [vmem:[#allocation2 + $0xa8] sm:$0xff] }
  0x65   : > { %5200 = vmatmul.mubr.msk.f32.gmra.mrb[30].mxu1 %vm214_vm1, %v403_v38  ;;  %5450 = vmatmul.mubr.msk.f32.gmra.mrb[10].mxu0 %vm214_vm1, %v6417_v39  ;;  %v357_v38 = vld [vmem:[#allocation2 + $0xb0] sm:$0xff] }
  0x66   : > { %5202 = vmatprep.mubr.msk.f32.mxu1 %vm214_vm1, %v404_v40  ;;  %5452 = vmatprep.mubr.msk.f32.mxu0 %vm214_vm1, %v6419_v41  ;;  %v6557_v40 = vld [vmem:[%s7122_s1 + $0x20] sm:$0xf] }
  0x69   : > { %5203 = vmatmul.mubr.msk.f32.gmra.mrb[32].mxu1 %vm214_vm1, %v405_v42  ;;  %5453 = vmatmul.mubr.msk.f32.gmra.mrb[12].mxu0 %vm214_vm1, %v6427_v43  ;;  %v358_v42 = vld [vmem:[#allocation2 + $0xb8] sm:$0xff] }
  0x6a   : > { %5205 = vmatprep.mubr.msk.f32.mxu1 %vm214_vm1, %v406_v44  ;;  %5455 = vmatprep.mubr.msk.f32.mxu0 %vm214_vm1, %v6429_v45  ;;  %v363_v44 = vld [vmem:[#allocation2 + $0xe0] sm:$0xff] }
  0x6d   : > { %5206 = vmatmul.mubr.msk.f32.gmra.mrb[34].mxu1 %vm214_vm1, %v407_v46  ;;  %5456 = vmatmul.mubr.msk.f32.gmra.mrb[14].mxu0 %vm214_vm1, %v6437_v47  ;;  %v6620_v46 = vld [vmem:[#allocation2 + $0x1a] sm:$0xff] }
  0x6e   : > { %5210 = vmatprep.mubr.msk.f32.mxu1 %vm214_vm1, %v335_v48  ;;  %5458 = vmatprep.mubr.msk.f32.mxu0 %vm214_vm1, %v6439_v49  ;;  %v6636_v48 = vld [vmem:[#allocation2 + $0x2a] sm:$0xff] }
  0x71   : > { %5211 = vmatmul.mubr.msk.f32.vlgmr.msra.gmra.mrb[0].mxu1 %vm214_vm1, %v336_v50  ;;  %5459 = vmatmul.mubr.msk.f32.gmra.mrb[16].mxu0 %vm214_vm1, %v6447_v51  ;;  %v6648_v50 = vld [vmem:[#allocation2 + $0x3a] sm:$0xff] }
  0x72   : > { %5213 = vmatprep.mubr.msk.f32.mxu1 %vm214_vm1, %v337_v52  ;;  %5461 = vmatprep.mubr.msk.f32.mxu0 %vm214_vm1, %v6449_v53  ;;  %v6660_v52 = vld [vmem:[#allocation2 + $0x4a] sm:$0xff] }
  0x73   : > { %5265 = vmatpush3.msk.msra.mxu1 %vm518_vm0, %v6252_v11  ;;  %v341_v11 = vld [vmem:[#allocation2 + $0x30] sm:$0xff] }
  0x74   : > { %5320 = vmatprep.subr.msk.mxu1 %vm518_vm0, %v6457_v54 }
  0x75   : > { %5214 = vmatmul.mubr.msk.f32.gmra.mrb[2].mxu1 %vm214_vm1, %v338_v55  ;;  %5462 = vmatmul.mubr.msk.f32.gmra.mrb[18].mxu0 %vm214_vm1, %v6462_v56  ;;  %v6674_v55 = vld [vmem:[#allocation2 + $0x62] sm:$0xff] }
  0x76   : > { %5216 = vmatprep.mubr.msk.f32.mxu1 %vm214_vm1, %v339_v57  ;;  %5464 = vmatprep.mubr.msk.f32.mxu0 %vm214_vm1, %v6466_v58  ;;  %v6686_v57 = vld [vmem:[#allocation2 + $0x72] sm:$0xff] }
  0x79   : > { %5217 = vmatmul.mubr.msk.f32.gmra.mrb[4].mxu1 %vm214_vm1, %v340_v59  ;;  %5465 = vmatmul.mubr.msk.f32.gmra.mrb[20].mxu0 %vm214_vm1, %v6476_v60  ;;  %v6698_v59 = vld [vmem:[#allocation2 + $0x82] sm:$0xff] }
  0x7a   : > { %5219 = vmatprep.mubr.msk.f32.mxu1 %vm214_vm1, %v341_v11  ;;  %5467 = vmatprep.mubr.msk.f32.mxu0 %vm214_vm1, %v6478_v61  ;;  %v6710_v11 = vld [vmem:[#allocation2 + $0x92] sm:$0xff] }
  0x7d   : > { %5220 = vmatmul.mubr.msk.f32.gmra.mrb[6].mxu1 %vm214_vm1, %v342_v62  ;;  %5468 = vmatmul.mubr.msk.f32.gmra.mrb[22].mxu0 %vm214_vm1, %v6486_v63  ;;  %v6719_v62 = vld [vmem:[#allocation2 + $0x9a] sm:$0xff] }
  0x7e   : > { %5222 = vmatprep.mubr.msk.f32.mxu1 %vm214_vm1, %v343_v0  ;;  %5470 = vmatprep.mubr.msk.f32.mxu0 %vm214_vm1, %v6488_v1  ;;  %v6721_v0 = vld [vmem:[#allocation2 + $0xa2] sm:$0xff] }
  0x81   : > { %5223 = vmatmul.mubr.msk.f32.gmra.mrb[8].mxu1 %vm214_vm1, %v344_v3  ;;  %5471 = vmatmul.mubr.msk.f32.gmra.mrb[24].mxu0 %vm214_vm1, %v6496_v4  ;;  %v6729_v3 = vld [vmem:[#allocation2 + $0xaa] sm:$0xff] }
  0x82   : > { %5225 = vmatprep.mubr.msk.f32.mxu1 %vm214_vm1, %v345_v5  ;;  %5473 = vmatprep.mubr.msk.f32.mxu0 %vm214_vm1, %v6498_v6  ;;  %v6731_v5 = vld [vmem:[#allocation2 + $0xb2] sm:$0xff] }
  0x85   : > { %5226 = vmatmul.mubr.msk.f32.gmra.mrb[10].mxu1 %vm214_vm1, %v346_v7  ;;  %5474 = vmatmul.mubr.msk.f32.gmra.mrb[26].mxu0 %vm214_vm1, %v6506_v8  ;;  %v6740_v7 = vld [vmem:[#allocation2 + $0xba] sm:$0xff] }
  0x86   : > { %5228 = vmatprep.mubr.msk.f32.mxu1 %vm214_vm1, %v347_v9  ;;  %5476 = vmatprep.mubr.msk.f32.mxu0 %vm214_vm1, %v6508_v10  ;;  %v6743_v9 = vld [vmem:[#allocation2 + $0xc2] sm:$0xff] }
  0x89   : > { %5229 = vmatmul.mubr.msk.f32.gmra.mrb[12].mxu1 %vm214_vm1, %v348_v12  ;;  %5477 = vmatmul.mubr.msk.f32.gmra.mrb[28].mxu0 %vm214_vm1, %v6516_v13  ;;  %v6751_v12 = vld [vmem:[#allocation2 + $0xca] sm:$0xff] }
  0x8a   : > { %5231 = vmatprep.mubr.msk.f32.mxu1 %vm214_vm1, %v349_v14  ;;  %5479 = vmatprep.mubr.msk.f32.mxu0 %vm214_vm1, %v6518_v15  ;;  %v6753_v14 = vld [vmem:[#allocation2 + $0xd2] sm:$0xff] }
  0x8d   : > { %5232 = vmatmul.mubr.msk.f32.gmra.mrb[14].mxu1 %vm214_vm1, %v350_v16  ;;  %5480 = vmatmul.mubr.msk.f32.gmra.mrb[30].mxu0 %vm214_vm1, %v6526_v17  ;;  %v6761_v16 = vld [vmem:[#allocation2 + $0xda] sm:$0xff] }
  0x8e   : > { %5234 = vmatprep.mubr.msk.f32.mxu1 %vm214_vm1, %v351_v20  ;;  %5482 = vmatprep.mubr.msk.f32.mxu0 %vm214_vm1, %v6528_v21  ;;  %v6763_v20 = vld [vmem:[#allocation2 + $0xe2] sm:$0xff] }
  0x91   : > { %5235 = vmatmul.mubr.msk.f32.gmra.mrb[16].mxu1 %vm214_vm1, %v352_v22  ;;  %5483 = vmatmul.mubr.msk.f32.gmra.mrb[32].mxu0 %vm214_vm1, %v6536_v24  ;;  %v6771_v22 = vld [vmem:[#allocation2 + $0xea] sm:$0xff] }
  0x92   : > { %5237 = vmatprep.mubr.msk.f32.mxu1 %vm214_vm1, %v353_v26  ;;  %5485 = vmatprep.mubr.msk.f32.mxu0 %vm214_vm1, %v6538_v28  ;;  %v6773_v26 = vld [vmem:[#allocation2 + $0xf2] sm:$0xff] }
  0x95   : > { %5238 = vmatmul.mubr.msk.f32.gmra.mrb[18].mxu1 %vm214_vm1, %v354_v30  ;;  %5486 = vmatmul.mubr.msk.f32.gmra.mrb[34].mxu0 %vm214_vm1, %v6546_v32  ;;  %v6781_v30 = vld [vmem:[#allocation2 + $0xfa] sm:$0xff] }
  0x96   : > { %5240 = vmatprep.mubr.msk.f32.mxu1 %vm214_vm1, %v355_v34  ;;  %5490 = vmatprep.mubr.msk.f32.mxu0 %vm214_vm1, %v6362_v19  ;;  %v359_v19 = vld [vmem:[#allocation2 + $0xc0] sm:$0xff] }
  0x97   : > { %v6783_v34 = vld [vmem:[#allocation2 + $0x102] sm:$0xff] }
  0x99   : > { %5241 = vmatmul.mubr.msk.f32.gmra.mrb[20].mxu1 %vm214_vm1, %v356_v36  ;;  %5491 = vmatmul.mubr.msk.f32.vlgmr.msra.gmra.mrb[0].mxu0 %vm214_vm1, %v6373_v23  ;;  %v361_v23 = vld [vmem:[#allocation2 + $0xd0] sm:$0xff]  ;;  %v3285_v36 = vld [vmem:[#allocation2 + $0x85] sm:$0xff] }
  0x9a   : > { %5545 = vmatpush3.msk.msra.mxu0 %vm518_vm0, %v6360_v18  ;;  %5243 = vmatprep.mubr.msk.f32.mxu1 %vm214_vm1, %v357_v38  ;;  %v360_v18 = vld [vmem:[#allocation2 + $0xc8] sm:$0xff] }
  0x9b   : > { %5493 = vmatprep.mubr.msk.f32.mxu0 %vm214_vm1, %v6377_v25  ;;  %5600 = vmatprep.subr.msk.mxu0 %vm518_vm0, %v6557_v40  ;;  %v362_v25 = vld [vmem:[#allocation2 + $0xd8] sm:$0xff]  ;;  %v6791_v38 = vld [vmem:[#allocation2 + $0x10a] sm:$0xff] }
  0x9d   : > { %5244 = vmatmul.mubr.msk.f32.gmra.mrb[22].mxu1 %vm214_vm1, %v358_v42  ;;  %5494 = vmatmul.mubr.msk.f32.gmra.mrb[2].mxu0 %vm214_vm1, %v6387_v27  ;;  %v364_v27 = vld [vmem:[#allocation2 + $0xe8] sm:$0xff]  ;;  %v6793_v42 = vld [vmem:[#allocation2 + $0x112] sm:$0xff] }
  0x9e   : > { %5246 = vmatprep.mubr.msk.f32.mxu1 %vm214_vm1, %v359_v19  ;;  %5496 = vmatprep.mubr.msk.f32.mxu0 %vm214_vm1, %v6389_v29  ;;  %v365_v29 = vld [vmem:[#allocation2 + $0xf0] sm:$0xff] }
  0x9f   : > { %v3287_v19 = vld [vmem:[#allocation2 + $0x95] sm:$0xff] }
  0xa1   : > { %5247 = vmatmul.mubr.msk.f32.gmra.mrb[24].mxu1 %vm214_vm1, %v360_v18  ;;  %5497 = vmatmul.mubr.msk.f32.gmra.mrb[4].mxu0 %vm214_vm1, %v6397_v31  ;;  %v366_v31 = vld [vmem:[#allocation2 + $0xf8] sm:$0xff] }
  0xa2   : > { %5249 = vmatprep.mubr.msk.f32.mxu1 %vm214_vm1, %v361_v23  ;;  %5499 = vmatprep.mubr.msk.f32.mxu0 %vm214_vm1, %v6399_v33  ;;  %v367_v33 = vld [vmem:[#allocation2 + $0x100] sm:$0xff] }
  0xa3   : > { %v6801_v18 = vld [vmem:[#allocation2 + $0x11a] sm:$0xff] }
  0xa4   : > { %v3288_v23 = vld [vmem:[#allocation2 + $0x9d] sm:$0xff] }
  0xa5   : > { %5250 = vmatmul.mubr.msk.f32.gmra.mrb[26].mxu1 %vm214_vm1, %v362_v25  ;;  %5500 = vmatmul.mubr.msk.f32.gmra.mrb[6].mxu0 %vm214_vm1, %v6407_v35  ;;  %v368_v35 = vld [vmem:[#allocation2 + $0x108] sm:$0xff] }
  0xa6   : > { %5252 = vmatprep.mubr.msk.f32.mxu1 %vm214_vm1, %v363_v44  ;;  %5502 = vmatprep.mubr.msk.f32.mxu0 %vm214_vm1, %v6409_v37  ;;  %v369_v37 = vld [vmem:[#allocation2 + $0x110] sm:$0xff]  ;;  %v3289_v25 = vld [vmem:[#allocation2 + $0xa5] sm:$0xff] }
  0xa7   : > { %v3290_v44 = vld [vmem:[#allocation2 + $0xad] sm:$0xff] }
  0xa9   : > { %5253 = vmatmul.mubr.msk.f32.gmra.mrb[28].mxu1 %vm214_vm1, %v364_v27  ;;  %5503 = vmatmul.mubr.msk.f32.gmra.mrb[8].mxu0 %vm214_vm1, %v6417_v39  ;;  %v370_v39 = vld [vmem:[#allocation2 + $0x118] sm:$0xff] }
  0xaa   : > { %5255 = vmatprep.mubr.msk.f32.mxu1 %vm214_vm1, %v365_v29  ;;  %5505 = vmatprep.mubr.msk.f32.mxu0 %vm214_vm1, %v6419_v41  ;;  %v1123_v41 = vld [vmem:[#allocation2 + $0x2] sm:$0xff]  ;;  %v3291_v27 = vld [vmem:[#allocation2 + $0xb5] sm:$0xff] }
  0xab   : > { %v3292_v29 = vld [vmem:[#allocation2 + $0xbd] sm:$0xff] }
  0xad   : > { %5256 = vmatmul.mubr.msk.f32.gmra.mrb[30].mxu1 %vm214_vm1, %v366_v31  ;;  %5506 = vmatmul.mubr.msk.f32.gmra.mrb[10].mxu0 %vm214_vm1, %v6427_v43  ;;  %v1124_v43 = vld [vmem:[#allocation2 + $0xa] sm:$0xff] }
  0xae   : > { %5258 = vmatprep.mubr.msk.f32.mxu1 %vm214_vm1, %v367_v33  ;;  %5508 = vmatprep.mubr.msk.f32.mxu0 %vm214_vm1, %v6429_v45  ;;  %v6611_v45 = vld [vmem:[#allocation2 + $0x12] sm:$0xff]  ;;  %v3293_v31 = vld [vmem:[#allocation2 + $0xc5] sm:$0xff] }
  0xaf   : > { %v3294_v33 = vld [vmem:[#allocation2 + $0xcd] sm:$0xff] }
  0xb1   : > { %5259 = vmatmul.mubr.msk.f32.gmra.mrb[32].mxu1 %vm214_vm1, %v368_v35  ;;  %5509 = vmatmul.mubr.msk.f32.gmra.mrb[12].mxu0 %vm214_vm1, %v6437_v47  ;;  %v6624_v47 = vld [vmem:[#allocation2 + $0x22] sm:$0xff]  ;;  %v3295_v35 = vld [vmem:[#allocation2 + $0xd5] sm:$0xff] }
  0xb2   : > { %5261 = vmatprep.mubr.msk.f32.mxu1 %vm214_vm1, %v369_v37  ;;  %5511 = vmatprep.mubr.msk.f32.mxu0 %vm214_vm1, %v6439_v49  ;;  %v6638_v49 = vld [vmem:[#allocation2 + $0x32] sm:$0xff]  ;;  %v3297_v37 = vld [vmem:[#allocation2 + $0xe5] sm:$0xff] }
  0xb5   : > { %5262 = vmatmul.mubr.msk.f32.gmra.mrb[34].mxu1 %vm214_vm1, %v370_v39  ;;  %5512 = vmatmul.mubr.msk.f32.gmra.mrb[14].mxu0 %vm214_vm1, %v6447_v51  ;;  %v6650_v51 = vld [vmem:[#allocation2 + $0x42] sm:$0xff]  ;;  %v3298_v39 = vld [vmem:[#allocation2 + $0xed] sm:$0xff] }
  0xb6   : > { %5266 = vmatprep.mubr.msk.f32.mxu1 %vm214_vm1, %v1123_v41  ;;  %5514 = vmatprep.mubr.msk.f32.mxu0 %vm214_vm1, %v6449_v53  ;;  %v6662_v53 = vld [vmem:[#allocation2 + $0x52] sm:$0xff] }
  0xb7   : > { %v3299_v41 = vld [vmem:[#allocation2 + $0xf5] sm:$0xff] }
  0xb9   : > { %5267 = vmatmul.mubr.msk.f32.vlgmr.msra.gmra.mrb[0].mxu1 %vm214_vm1, %v1124_v43  ;;  %5515 = vmatmul.mubr.msk.f32.gmra.mrb[16].mxu0 %vm214_vm1, %v6462_v56  ;;  %v6684_v56 = vld [vmem:[#allocation2 + $0x6a] sm:$0xff]  ;;  %v3300_v43 = vld [vmem:[#allocation2 + $0xfd] sm:$0xff] }
  0xba   : > { %5269 = vmatprep.mubr.msk.f32.mxu1 %vm214_vm1, %v6611_v45  ;;  %5517 = vmatprep.mubr.msk.f32.mxu0 %vm214_vm1, %v6466_v58  ;;  %v6696_v58 = vld [vmem:[#allocation2 + $0x7a] sm:$0xff] }
  0xbb   : > { %5321 = vmatpush3.msk.msra.mxu1 %vm518_vm0, %v6457_v54  ;;  %v6672_v54 = vld [vmem:[#allocation2 + $0x5a] sm:$0xff] }
  0xbc   : > { %5656 = vmatprep.subr.msk.mxu1 %vm518_vm0, %v6214_v2 }
  0xbd   : > { %5270 = vmatmul.mubr.msk.f32.gmra.mrb[2].mxu1 %vm214_vm1, %v6620_v46  ;;  %5518 = vmatmul.mubr.msk.f32.gmra.mrb[18].mxu0 %vm214_vm1, %v6476_v60  ;;  %v6708_v60 = vld [vmem:[#allocation2 + $0x8a] sm:$0xff] }
  0xbe   : > { %5272 = vmatprep.mubr.msk.f32.mxu1 %vm214_vm1, %v6624_v47  ;;  %5520 = vmatprep.mubr.msk.f32.mxu0 %vm214_vm1, %v6478_v61  ;;  %v2877_v61 = vld [vmem:[#allocation2 + $0x134] sm:$0xff] }
  0xc1   : > { %5273 = vmatmul.mubr.msk.f32.gmra.mrb[4].mxu1 %vm214_vm1, %v6636_v48  ;;  %5521 = vmatmul.mubr.msk.f32.gmra.mrb[20].mxu0 %vm214_vm1, %v6486_v63  ;;  %v2878_v63 = vld [vmem:[#allocation2 + $0x13c] sm:$0xff] }
  0xc2   : > { %5275 = vmatprep.mubr.msk.f32.mxu1 %vm214_vm1, %v6638_v49  ;;  %5523 = vmatprep.mubr.msk.f32.mxu0 %vm214_vm1, %v6488_v1  ;;  %v3273_v1 = vld [vmem:[#allocation2 + $0x25] sm:$0xff] }
  0xc5   : > { %5276 = vmatmul.mubr.msk.f32.gmra.mrb[6].mxu1 %vm214_vm1, %v6648_v50  ;;  %5524 = vmatmul.mubr.msk.f32.gmra.mrb[22].mxu0 %vm214_vm1, %v6496_v4  ;;  %v3274_v4 = vld [vmem:[#allocation2 + $0x2d] sm:$0xff] }
  0xc6   : > { %5278 = vmatprep.mubr.msk.f32.mxu1 %vm214_vm1, %v6650_v51  ;;  %5526 = vmatprep.mubr.msk.f32.mxu0 %vm214_vm1, %v6498_v6  ;;  %v3275_v6 = vld [vmem:[#allocation2 + $0x35] sm:$0xff] }
  0xc9   : > { %5279 = vmatmul.mubr.msk.f32.gmra.mrb[8].mxu1 %vm214_vm1, %v6660_v52  ;;  %5527 = vmatmul.mubr.msk.f32.gmra.mrb[24].mxu0 %vm214_vm1, %v6506_v8  ;;  %v3276_v8 = vld [vmem:[#allocation2 + $0x3d] sm:$0xff] }
  0xca   : > { %5281 = vmatprep.mubr.msk.f32.mxu1 %vm214_vm1, %v6662_v53  ;;  %5529 = vmatprep.mubr.msk.f32.mxu0 %vm214_vm1, %v6508_v10  ;;  %v3277_v10 = vld [vmem:[#allocation2 + $0x45] sm:$0xff] }
  0xcd   : > { %5282 = vmatmul.mubr.msk.f32.gmra.mrb[10].mxu1 %vm214_vm1, %v6672_v54  ;;  %5530 = vmatmul.mubr.msk.f32.gmra.mrb[26].mxu0 %vm214_vm1, %v6516_v13  ;;  %v3278_v13 = vld [vmem:[#allocation2 + $0x4d] sm:$0xff] }
  0xce   : > { %5284 = vmatprep.mubr.msk.f32.mxu1 %vm214_vm1, %v6674_v55  ;;  %5532 = vmatprep.mubr.msk.f32.mxu0 %vm214_vm1, %v6518_v15  ;;  %v3279_v15 = vld [vmem:[#allocation2 + $0x55] sm:$0xff] }
  0xd1   : > { %5285 = vmatmul.mubr.msk.f32.gmra.mrb[12].mxu1 %vm214_vm1, %v6684_v56  ;;  %5533 = vmatmul.mubr.msk.f32.gmra.mrb[28].mxu0 %vm214_vm1, %v6526_v17  ;;  %v3280_v17 = vld [vmem:[#allocation2 + $0x5d] sm:$0xff] }
  0xd2   : > { %5287 = vmatprep.mubr.msk.f32.mxu1 %vm214_vm1, %v6686_v57  ;;  %5535 = vmatprep.mubr.msk.f32.mxu0 %vm214_vm1, %v6528_v21  ;;  %v3281_v21 = vld [vmem:[#allocation2 + $0x65] sm:$0xff] }
  0xd5   : > { %5288 = vmatmul.mubr.msk.f32.gmra.mrb[14].mxu1 %vm214_vm1, %v6696_v58  ;;  %5536 = vmatmul.mubr.msk.f32.gmra.mrb[30].mxu0 %vm214_vm1, %v6536_v24  ;;  %v3282_v24 = vld [vmem:[#allocation2 + $0x6d] sm:$0xff] }
  0xd6   : > { %5290 = vmatprep.mubr.msk.f32.mxu1 %vm214_vm1, %v6698_v59  ;;  %5538 = vmatprep.mubr.msk.f32.mxu0 %vm214_vm1, %v6538_v28  ;;  %v3283_v28 = vld [vmem:[#allocation2 + $0x75] sm:$0xff] }
  0xd9   : > { %5291 = vmatmul.mubr.msk.f32.gmra.mrb[16].mxu1 %vm214_vm1, %v6708_v60  ;;  %5539 = vmatmul.mubr.msk.f32.gmra.mrb[32].mxu0 %vm214_vm1, %v6546_v32  ;;  %v3284_v32 = vld [vmem:[#allocation2 + $0x7d] sm:$0xff] }
  0xda   : > { %5293 = vmatprep.mubr.msk.f32.mxu1 %vm214_vm1, %v6710_v11  ;;  %5541 = vmatprep.mubr.msk.f32.mxu0 %vm214_vm1, %v2877_v61  ;;  %v3712_v61 = vld [vmem:[#allocation2 + $0x6e] sm:$0xff] }
  0xdd   : > { %5294 = vmatmul.mubr.msk.f32.gmra.mrb[18].mxu1 %vm214_vm1, %v6719_v62  ;;  %5542 = vmatmul.mubr.msk.f32.gmra.mrb[34].mxu0 %vm214_vm1, %v2878_v63  ;;  %v3714_v63 = vld [vmem:[#allocation2 + $0x7e] sm:$0xff] }
  0xde   : > { %5296 = vmatprep.mubr.msk.f32.mxu1 %vm214_vm1, %v6721_v0  ;;  %5546 = vmatprep.mubr.msk.f32.mxu0 %vm214_vm1, %v3273_v1  ;;  %v3716_v1 = vld [vmem:[#allocation2 + $0x8e] sm:$0xff] }
  0xe1   : > { %5297 = vmatmul.mubr.msk.f32.gmra.mrb[20].mxu1 %vm214_vm1, %v6729_v3  ;;  %5547 = vmatmul.mubr.msk.f32.vlgmr.msra.gmra.mrb[0].mxu0 %vm214_vm1, %v3274_v4  ;;  %v3717_v4 = vld [vmem:[#allocation2 + $0x96] sm:$0xff] }
  0xe2   : > { %5601 = vmatpush3.msk.msra.mxu0 %vm518_vm0, %v6557_v40  ;;  %5299 = vmatprep.mubr.msk.f32.mxu1 %vm214_vm1, %v6731_v5  ;;  %v3286_v40 = vld [vmem:[#allocation2 + $0x8d] sm:$0xff] }
  0xe3   : > { %5549 = vmatprep.mubr.msk.f32.mxu0 %vm214_vm1, %v3275_v6  ;;  %v3718_v6 = vld [vmem:[#allocation2 + $0x9e] sm:$0xff] }
  0xe5   : > { %5300 = vmatmul.mubr.msk.f32.gmra.mrb[22].mxu1 %vm214_vm1, %v6740_v7  ;;  %5550 = vmatmul.mubr.msk.f32.gmra.mrb[2].mxu0 %vm214_vm1, %v3276_v8  ;;  %v3719_v8 = vld [vmem:[#allocation2 + $0xa6] sm:$0xff] }
  0xe6   : > { %5302 = vmatprep.mubr.msk.f32.mxu1 %vm214_vm1, %v6743_v9  ;;  %5552 = vmatprep.mubr.msk.f32.mxu0 %vm214_vm1, %v3277_v10  ;;  %v3720_v10 = vld [vmem:[#allocation2 + $0xae] sm:$0xff] }
  0xe9   : > { %5303 = vmatmul.mubr.msk.f32.gmra.mrb[24].mxu1 %vm214_vm1, %v6751_v12  ;;  %5553 = vmatmul.mubr.msk.f32.gmra.mrb[4].mxu0 %vm214_vm1, %v3278_v13  ;;  %v3721_v13 = vld [vmem:[#allocation2 + $0xb6] sm:$0xff] }
  0xea   : > { %5305 = vmatprep.mubr.msk.f32.mxu1 %vm214_vm1, %v6753_v14  ;;  %5555 = vmatprep.mubr.msk.f32.mxu0 %vm214_vm1, %v3279_v15  ;;  %v3722_v15 = vld [vmem:[#allocation2 + $0xbe] sm:$0xff] }
  0xed   : > { %5306 = vmatmul.mubr.msk.f32.gmra.mrb[26].mxu1 %vm214_vm1, %v6761_v16  ;;  %5556 = vmatmul.mubr.msk.f32.gmra.mrb[6].mxu0 %vm214_vm1, %v3280_v17  ;;  %v3723_v17 = vld [vmem:[#allocation2 + $0xc6] sm:$0xff] }
  0xee   : > { %5308 = vmatprep.mubr.msk.f32.mxu1 %vm214_vm1, %v6763_v20  ;;  %5558 = vmatprep.mubr.msk.f32.mxu0 %vm214_vm1, %v3281_v21  ;;  %v3724_v21 = vld [vmem:[#allocation2 + $0xce] sm:$0xff] }
  0xf1   : > { %5309 = vmatmul.mubr.msk.f32.gmra.mrb[28].mxu1 %vm214_vm1, %v6771_v22  ;;  %5559 = vmatmul.mubr.msk.f32.gmra.mrb[8].mxu0 %vm214_vm1, %v3282_v24  ;;  %v3725_v24 = vld [vmem:[#allocation2 + $0xd6] sm:$0xff] }
  0xf2   : > { %5311 = vmatprep.mubr.msk.f32.mxu1 %vm214_vm1, %v6773_v26  ;;  %5561 = vmatprep.mubr.msk.f32.mxu0 %vm214_vm1, %v3283_v28  ;;  %v3726_v28 = vld [vmem:[#allocation2 + $0xde] sm:$0xff] }
  0xf5   : > { %5312 = vmatmul.mubr.msk.f32.gmra.mrb[30].mxu1 %vm214_vm1, %v6781_v30  ;;  %5562 = vmatmul.mubr.msk.f32.gmra.mrb[10].mxu0 %vm214_vm1, %v3284_v32  ;;  %v3727_v32 = vld [vmem:[#allocation2 + $0xe6] sm:$0xff] }
  0xf6   : > { %5314 = vmatprep.mubr.msk.f32.mxu1 %vm214_vm1, %v6783_v34  ;;  %5564 = vmatprep.mubr.msk.f32.mxu0 %vm214_vm1, %v3285_v36  ;;  %v3728_v36 = vld [vmem:[#allocation2 + $0xee] sm:$0xff] }
  0xf9   : > { %5315 = vmatmul.mubr.msk.f32.gmra.mrb[32].mxu1 %vm214_vm1, %v6791_v38  ;;  %5565 = vmatmul.mubr.msk.f32.gmra.mrb[12].mxu0 %vm214_vm1, %v3286_v40  ;;  %v3729_v40 = vld [vmem:[#allocation2 + $0xf6] sm:$0xff] }
  0xfa   : > { %5317 = vmatprep.mubr.msk.f32.mxu1 %vm214_vm1, %v6793_v42  ;;  %5567 = vmatprep.mubr.msk.f32.mxu0 %vm214_vm1, %v3287_v19  ;;  %v3730_v19 = vld [vmem:[#allocation2 + $0xfe] sm:$0xff] }
  0xfd   : > { %5318 = vmatmul.mubr.msk.f32.gmra.mrb[34].mxu1 %vm214_vm1, %v6801_v18  ;;  %5568 = vmatmul.mubr.msk.f32.gmra.mrb[14].mxu0 %vm214_vm1, %v3288_v23  ;;  %v3731_v23 = vld [vmem:[#allocation2 + $0x106] sm:$0xff] }
  0xfe   : > { %5322 = vmatprep.mubr.msk.f32.mxu1 %vm214_vm1, %v6611_v45  ;;  %5570 = vmatprep.mubr.msk.f32.mxu0 %vm214_vm1, %v3289_v25  ;;  %v3301_v45 = vld [vmem:[#allocation2 + $0x105] sm:$0xff] }
  0xff   : > { %v2014_v25 = vld [vmem:[#allocation2 + $0x10b] sm:$0xff] }
 0x101   : > { %5323 = vmatmul.mubr.msk.f32.vlgmr.msra.gmra.mrb[0].mxu1 %vm214_vm1, %v6620_v46  ;;  %5571 = vmatmul.mubr.msk.f32.gmra.mrb[16].mxu0 %vm214_vm1, %v3290_v44  ;;  %v3302_v46 = vld [vmem:[#allocation2 + $0x10d] sm:$0xff] }
 0x102   : > { %5325 = vmatprep.mubr.msk.f32.mxu1 %vm214_vm1, %v6624_v47  ;;  %5573 = vmatprep.mubr.msk.f32.mxu0 %vm214_vm1, %v3291_v27  ;;  %v3303_v47 = vld [vmem:[#allocation2 + $0x115] sm:$0xff] }
 0x103   : > { %5657 = vmatpush3.msk.msra.mxu1 %vm518_vm0, %v6214_v2  ;;  %v3296_v2 = vld [vmem:[#allocation2 + $0xdd] sm:$0xff]  ;;  %v3732_v44 = vld [vmem:[#allocation2 + $0x10e] sm:$0xff] }
 0x104   : > { %v2015_v27 = vld [vmem:[#allocation2 + $0x113] sm:$0xff] }
 0x105   : > { %5326 = vmatmul.mubr.msk.f32.gmra.mrb[2].mxu1 %vm214_vm1, %v6636_v48  ;;  %5574 = vmatmul.mubr.msk.f32.gmra.mrb[18].mxu0 %vm214_vm1, %v3292_v29  ;;  %v3304_v48 = vld [vmem:[#allocation2 + $0x11d] sm:$0xff] }
 0x106   : > { %5328 = vmatprep.mubr.msk.f32.mxu1 %vm214_vm1, %v6638_v49  ;;  %5576 = vmatprep.mubr.msk.f32.mxu0 %vm214_vm1, %v3293_v31  ;;  %v3305_v49 = vld [vmem:[#allocation2 + $0x125] sm:$0xff]  ;;  %v3733_v29 = vld [vmem:[#allocation2 + $0x116] sm:$0xff] }
 0x107   : > { %v2016_v31 = vld [vmem:[#allocation2 + $0x11b] sm:$0xff] }
 0x109   : > { %5329 = vmatmul.mubr.msk.f32.gmra.mrb[4].mxu1 %vm214_vm1, %v6648_v50  ;;  %5577 = vmatmul.mubr.msk.f32.gmra.mrb[20].mxu0 %vm214_vm1, %v3294_v33  ;;  %v3306_v50 = vld [vmem:[#allocation2 + $0x12d] sm:$0xff]  ;;  %v3734_v33 = vld [vmem:[#allocation2 + $0x11e] sm:$0xff] }
 0x10a   : > { %5331 = vmatprep.mubr.msk.f32.mxu1 %vm214_vm1, %v6650_v51  ;;  %5579 = vmatprep.mubr.msk.f32.mxu0 %vm214_vm1, %v3295_v35  ;;  %v3307_v51 = vld [vmem:[#allocation2 + $0x135] sm:$0xff]  ;;  %v2017_v35 = vld [vmem:[#allocation2 + $0x123] sm:$0xff] }
 0x10d   : > { %5332 = vmatmul.mubr.msk.f32.gmra.mrb[6].mxu1 %vm214_vm1, %v6660_v52  ;;  %5580 = vmatmul.mubr.msk.f32.gmra.mrb[22].mxu0 %vm214_vm1, %v3296_v2  ;;  %v3308_v52 = vld [vmem:[#allocation2 + $0x13d] sm:$0xff]  ;;  %v3735_v2 = vld [vmem:[#allocation2 + $0x126] sm:$0xff] }
 0x10e   : > { %5334 = vmatprep.mubr.msk.f32.mxu1 %vm214_vm1, %v6662_v53  ;;  %5582 = vmatprep.mubr.msk.f32.mxu0 %vm214_vm1, %v3297_v37  ;;  %v3703_v53 = vld [vmem:[#allocation2 + $0x26] sm:$0xff] }
 0x10f   : > { %v2018_v37 = vld [vmem:[#allocation2 + $0x12b] sm:$0xff] }
 0x111   : > { %5335 = vmatmul.mubr.msk.f32.gmra.mrb[8].mxu1 %vm214_vm1, %v6672_v54  ;;  %5583 = vmatmul.mubr.msk.f32.gmra.mrb[24].mxu0 %vm214_vm1, %v3298_v39  ;;  %v3704_v54 = vld [vmem:[#allocation2 + $0x2e] sm:$0xff] }
 0x112   : > { %5337 = vmatprep.mubr.msk.f32.mxu1 %vm214_vm1, %v6674_v55  ;;  %5585 = vmatprep.mubr.msk.f32.mxu0 %vm214_vm1, %v3299_v41  ;;  %v3705_v55 = vld [vmem:[#allocation2 + $0x36] sm:$0xff]  ;;  %v3736_v39 = vld [vmem:[#allocation2 + $0x12e] sm:$0xff] }
 0x113   : > { %v3737_v41 = vld [vmem:[#allocation2 + $0x136] sm:$0xff] }
 0x115   : > { %5338 = vmatmul.mubr.msk.f32.gmra.mrb[10].mxu1 %vm214_vm1, %v6684_v56  ;;  %5586 = vmatmul.mubr.msk.f32.gmra.mrb[26].mxu0 %vm214_vm1, %v3300_v43  ;;  %v3706_v56 = vld [vmem:[#allocation2 + $0x3e] sm:$0xff] }
 0x116   : > { %5340 = vmatprep.mubr.msk.f32.mxu1 %vm214_vm1, %v6686_v57  ;;  %5588 = vmatprep.mubr.msk.f32.mxu0 %vm214_vm1, %v3301_v45  ;;  %v3707_v57 = vld [vmem:[#allocation2 + $0x46] sm:$0xff]  ;;  %v3738_v43 = vld [vmem:[#allocation2 + $0x13e] sm:$0xff] }
 0x119   : > { %5341 = vmatmul.mubr.msk.f32.gmra.mrb[12].mxu1 %vm214_vm1, %v6696_v58  ;;  %5589 = vmatmul.mubr.msk.f32.gmra.mrb[28].mxu0 %vm214_vm1, %v3302_v46  ;;  %v3708_v58 = vld [vmem:[#allocation2 + $0x4e] sm:$0xff] }
 0x11a   : > { %5343 = vmatprep.mubr.msk.f32.mxu1 %vm214_vm1, %v6698_v59  ;;  %5591 = vmatprep.mubr.msk.f32.mxu0 %vm214_vm1, %v3303_v47  ;;  %v3709_v59 = vld [vmem:[#allocation2 + $0x56] sm:$0xff] }
 0x11d   : > { %5344 = vmatmul.mubr.msk.f32.gmra.mrb[14].mxu1 %vm214_vm1, %v6708_v60  ;;  %5592 = vmatmul.mubr.msk.f32.gmra.mrb[30].mxu0 %vm214_vm1, %v3304_v48  ;;  %v3710_v60 = vld [vmem:[#allocation2 + $0x5e] sm:$0xff] }
 0x11e   : > { %5346 = vmatprep.mubr.msk.f32.mxu1 %vm214_vm1, %v6710_v11  ;;  %5594 = vmatprep.mubr.msk.f32.mxu0 %vm214_vm1, %v3305_v49  ;;  %v3711_v11 = vld [vmem:[#allocation2 + $0x66] sm:$0xff] }
 0x121   : > { %5347 = vmatmul.mubr.msk.f32.gmra.mrb[16].mxu1 %vm214_vm1, %v6719_v62  ;;  %5595 = vmatmul.mubr.msk.f32.gmra.mrb[32].mxu0 %vm214_vm1, %v3306_v50  ;;  %v3713_v62 = vld [vmem:[#allocation2 + $0x76] sm:$0xff] }
 0x122   : > { %5349 = vmatprep.mubr.msk.f32.mxu1 %vm214_vm1, %v6721_v0  ;;  %5597 = vmatprep.mubr.msk.f32.mxu0 %vm214_vm1, %v3307_v51  ;;  %v3715_v0 = vld [vmem:[#allocation2 + $0x86] sm:$0xff] }
 0x125   : > { %5350 = vmatmul.mubr.msk.f32.gmra.mrb[18].mxu1 %vm214_vm1, %v6729_v3  ;;  %5598 = vmatmul.mubr.msk.f32.gmra.mrb[34].mxu0 %vm214_vm1, %v3308_v52  ;;  %v1587_v3 = vld [vmem:[#allocation2 + $0x122] sm:$0xff] }
 0x126   : > { %5352 = vmatprep.mubr.msk.f32.mxu1 %vm214_vm1, %v6731_v5  ;;  %5602 = vmatprep.mubr.msk.f32.mxu0 %vm214_vm1, %v3703_v53  ;;  %v1588_v5 = vld [vmem:[#allocation2 + $0x12a] sm:$0xff] }
 0x129   : > { %5353 = vmatmul.mubr.msk.f32.gmra.mrb[20].mxu1 %vm214_vm1, %v6740_v7  ;;  %5603 = vmatmul.mubr.msk.f32.vlgmr.msra.gmra.mrb[0].mxu0 %vm214_vm1, %v3704_v54  ;;  %v2001_v7 = vld [vmem:[#allocation2 + $0xa3] sm:$0xff] }
 0x12a   : > { %5355 = vmatprep.mubr.msk.f32.mxu1 %vm214_vm1, %v6743_v9  ;;  %5605 = vmatprep.mubr.msk.f32.mxu0 %vm214_vm1, %v3705_v55  ;;  %v2002_v9 = vld [vmem:[#allocation2 + $0xab] sm:$0xff] }
 0x12d   : > { %5356 = vmatmul.mubr.msk.f32.gmra.mrb[22].mxu1 %vm214_vm1, %v6751_v12  ;;  %5606 = vmatmul.mubr.msk.f32.gmra.mrb[2].mxu0 %vm214_vm1, %v3706_v56  ;;  %v2003_v12 = vld [vmem:[#allocation2 + $0xb3] sm:$0xff] }
 0x12e   : > { %5358 = vmatprep.mubr.msk.f32.mxu1 %vm214_vm1, %v6753_v14  ;;  %5608 = vmatprep.mubr.msk.f32.mxu0 %vm214_vm1, %v3707_v57  ;;  %v2004_v14 = vld [vmem:[#allocation2 + $0xbb] sm:$0xff] }
 0x131   : > { %5359 = vmatmul.mubr.msk.f32.gmra.mrb[24].mxu1 %vm214_vm1, %v6761_v16  ;;  %5609 = vmatmul.mubr.msk.f32.gmra.mrb[4].mxu0 %vm214_vm1, %v3708_v58  ;;  %v2005_v16 = vld [vmem:[#allocation2 + $0xc3] sm:$0xff] }
 0x132   : > { %5361 = vmatprep.mubr.msk.f32.mxu1 %vm214_vm1, %v6763_v20  ;;  %5611 = vmatprep.mubr.msk.f32.mxu0 %vm214_vm1, %v3709_v59  ;;  %v2006_v20 = vld [vmem:[#allocation2 + $0xcb] sm:$0xff] }
 0x135   : > { %5362 = vmatmul.mubr.msk.f32.gmra.mrb[26].mxu1 %vm214_vm1, %v6771_v22  ;;  %5612 = vmatmul.mubr.msk.f32.gmra.mrb[6].mxu0 %vm214_vm1, %v3710_v60  ;;  %v2007_v22 = vld [vmem:[#allocation2 + $0xd3] sm:$0xff] }
 0x136   : > { %5364 = vmatprep.mubr.msk.f32.mxu1 %vm214_vm1, %v6773_v26  ;;  %5614 = vmatprep.mubr.msk.f32.mxu0 %vm214_vm1, %v3711_v11  ;;  %v2008_v26 = vld [vmem:[#allocation2 + $0xdb] sm:$0xff] }
 0x139   : > { %5365 = vmatmul.mubr.msk.f32.gmra.mrb[28].mxu1 %vm214_vm1, %v6781_v30  ;;  %5615 = vmatmul.mubr.msk.f32.gmra.mrb[8].mxu0 %vm214_vm1, %v3712_v61  ;;  %v2009_v30 = vld [vmem:[#allocation2 + $0xe3] sm:$0xff] }
 0x13a   : > { %5367 = vmatprep.mubr.msk.f32.mxu1 %vm214_vm1, %v6783_v34  ;;  %5617 = vmatprep.mubr.msk.f32.mxu0 %vm214_vm1, %v3713_v62  ;;  %v2010_v34 = vld [vmem:[#allocation2 + $0xeb] sm:$0xff] }
 0x13d   : > { %5368 = vmatmul.mubr.msk.f32.gmra.mrb[30].mxu1 %vm214_vm1, %v6791_v38  ;;  %5618 = vmatmul.mubr.msk.f32.gmra.mrb[10].mxu0 %vm214_vm1, %v3714_v63  ;;  %v2011_v38 = vld [vmem:[#allocation2 + $0xf3] sm:$0xff]  ;;  %v6976_v63 = vld [vmem:[%s7123_s2] ss:$0 sm:$0xff] }
 0x13e   : > { %5370 = vmatprep.mubr.msk.f32.mxu1 %vm214_vm1, %v6793_v42  ;;  %5620 = vmatprep.mubr.msk.f32.mxu0 %vm214_vm1, %v3715_v0  ;;  %v2012_v42 = vld [vmem:[#allocation2 + $0xfb] sm:$0xff] }
 0x141   : > { %5371 = vmatmul.mubr.msk.f32.gmra.mrb[32].mxu1 %vm214_vm1, %v6801_v18  ;;  %5621 = vmatmul.mubr.msk.f32.gmra.mrb[12].mxu0 %vm214_vm1, %v3716_v1  ;;  %v2013_v18 = vld [vmem:[#allocation2 + $0x103] sm:$0xff] }
 0x142   : > { %5373 = vmatprep.mubr.msk.f32.mxu1 %vm214_vm1, %v1587_v3  ;;  %5623 = vmatprep.mubr.msk.f32.mxu0 %vm214_vm1, %v3717_v4 }
 0x145   : > { %5374 = vmatmul.mubr.msk.f32.gmra.mrb[34].mxu1 %vm214_vm1, %v1588_v5  ;;  %5624 = vmatmul.mubr.msk.f32.gmra.mrb[14].mxu0 %vm214_vm1, %v3718_v6 }
 0x146   : > { %5405 = vmatprep.mubr.msk.f32.mxu1 %vm214_vm1, %v2001_v7  ;;  %5626 = vmatprep.mubr.msk.f32.mxu0 %vm214_vm1, %v3719_v8 }
 0x149   : > { %5406 = vmatmul.mubr.msk.f32.vlgmr.msra.gmra.mrb[18].mxu1 %vm214_vm1, %v2002_v9  ;;  %5627 = vmatmul.mubr.msk.f32.gmra.mrb[16].mxu0 %vm214_vm1, %v3720_v10 }
 0x14a   : > { %5408 = vmatprep.mubr.msk.f32.mxu1 %vm214_vm1, %v2003_v12  ;;  %5629 = vmatprep.mubr.msk.f32.mxu0 %vm214_vm1, %v3721_v13 }
 0x14d   : > { %5409 = vmatmul.mubr.msk.f32.gmra.mrb[20].mxu1 %vm214_vm1, %v2004_v14  ;;  %5630 = vmatmul.mubr.msk.f32.gmra.mrb[18].mxu0 %vm214_vm1, %v3722_v15 }
 0x14e   : > { %5411 = vmatprep.mubr.msk.f32.mxu1 %vm214_vm1, %v2005_v16  ;;  %5632 = vmatprep.mubr.msk.f32.mxu0 %vm214_vm1, %v3723_v17 }
 0x151   : > { %5412 = vmatmul.mubr.msk.f32.gmra.mrb[22].mxu1 %vm214_vm1, %v2006_v20  ;;  %5633 = vmatmul.mubr.msk.f32.gmra.mrb[20].mxu0 %vm214_vm1, %v3724_v21 }
 0x152   : > { %5414 = vmatprep.mubr.msk.f32.mxu1 %vm214_vm1, %v2007_v22  ;;  %5635 = vmatprep.mubr.msk.f32.mxu0 %vm214_vm1, %v3725_v24 }
 0x155   : > { %5415 = vmatmul.mubr.msk.f32.gmra.mrb[24].mxu1 %vm214_vm1, %v2008_v26  ;;  %5636 = vmatmul.mubr.msk.f32.gmra.mrb[22].mxu0 %vm214_vm1, %v3726_v28 }
 0x156   : > { %5417 = vmatprep.mubr.msk.f32.mxu1 %vm214_vm1, %v2009_v30  ;;  %5638 = vmatprep.mubr.msk.f32.mxu0 %vm214_vm1, %v3727_v32 }
 0x159   : > { %5418 = vmatmul.mubr.msk.f32.gmra.mrb[26].mxu1 %vm214_vm1, %v2010_v34  ;;  %5639 = vmatmul.mubr.msk.f32.gmra.mrb[24].mxu0 %vm214_vm1, %v3728_v36 }
 0x15a   : > { %5420 = vmatprep.mubr.msk.f32.mxu1 %vm214_vm1, %v2011_v38  ;;  %5641 = vmatprep.mubr.msk.f32.mxu0 %vm214_vm1, %v3729_v40 }
 0x15d   : > { %5421 = vmatmul.mubr.msk.f32.gmra.mrb[28].mxu1 %vm214_vm1, %v2012_v42  ;;  %5642 = vmatmul.mubr.msk.f32.gmra.mrb[26].mxu0 %vm214_vm1, %v3730_v19 }
 0x15e   : > { %5423 = vmatprep.mubr.msk.f32.mxu1 %vm214_vm1, %v2013_v18  ;;  %5644 = vmatprep.mubr.msk.f32.mxu0 %vm214_vm1, %v3731_v23 }
 0x161   : > { %5424 = vmatmul.mubr.msk.f32.gmra.mrb[30].mxu1 %vm214_vm1, %v2014_v25  ;;  %5645 = vmatmul.mubr.msk.f32.gmra.mrb[28].mxu0 %vm214_vm1, %v3732_v44 }
 0x162   : > { %5426 = vmatprep.mubr.msk.f32.mxu1 %vm214_vm1, %v2015_v27  ;;  %5647 = vmatprep.mubr.msk.f32.mxu0 %vm214_vm1, %v3733_v29 }
 0x165   : > { %5427 = vmatmul.mubr.msk.f32.gmra.mrb[32].mxu1 %vm214_vm1, %v2016_v31  ;;  %5648 = vmatmul.mubr.msk.f32.gmra.mrb[30].mxu0 %vm214_vm1, %v3734_v33 }
 0x166   : > { %5429 = vmatprep.mubr.msk.f32.mxu1 %vm214_vm1, %v2017_v35  ;;  %5650 = vmatprep.mubr.msk.f32.mxu0 %vm214_vm1, %v3735_v2 }
 0x169   : > { %5430 = vmatmul.mubr.msk.f32.gmra.mrb[34].mxu1 %vm214_vm1, %v2018_v37  ;;  %5651 = vmatmul.mubr.msk.f32.gmra.mrb[32].mxu0 %vm214_vm1, %v3736_v39 }
 0x16a   : > { %5653 = vmatprep.mubr.msk.f32.mxu0 %vm214_vm1, %v3737_v41 }
 0x16d   : > { %5654 = vmatmul.mubr.msk.f32.gmra.mrb[34].mxu0 %vm214_vm1, %v3738_v43 }
 0x1d4   : > { %v5324_v45 = vpop.f32.mrb[0].mxu1 }
 0x1d5   : > { %v1768_v46 = vpop.f32.mrb[1].mxu1 }
 0x1d8   : > { %v5327_v47 = vpop.f32.mrb[2].mxu1 }
 0x1d9   : > { %v1778_v48 = vpop.f32.mrb[3].mxu1 }
 0x1dc   : > { %v5330_v49 = vpop.f32.mrb[4].mxu1 }
 0x1dd   : > { %v1788_v50 = vpop.f32.mrb[5].mxu1 }
 0x1e0   : > { %v5333_v51 = vpop.f32.mrb[6].mxu1 }
 0x1e1   : > { %v1798_v52 = vpop.f32.mrb[7].mxu1 }
 0x1e4   : > { %v6952_v53 = vpop.f32.mrb[8].mxu1 }
 0x1e5   : > { %v6954_v54 = vpop.f32.mrb[9].mxu1 }
 0x1e8   : > { %v6956_v55 = vpop.f32.mrb[10].mxu1 }
 0x1e9   : > { %v6958_v56 = vpop.f32.mrb[11].mxu1 }
 0x1ec   : > { %v6960_v57 = vpop.f32.mrb[12].mxu1 }
 0x1ed   : > { %v6962_v58 = vpop.f32.mrb[13].mxu1 }
 0x1f0   : > { %v6964_v59 = vpop.f32.mrb[14].mxu1 }
 0x1f1   : > { %v6966_v60 = vpop.f32.mrb[15].mxu1 }
 0x1f4   : > { %v6968_v11 = vpop.f32.mrb[16].mxu1 }
 0x1f5   : > { %v6970_v61 = vpop.f32.mrb[17].mxu1 }
 0x1fc   : > { %v5604_v62 = vpop.f32.mrb[0].mxu0 }
 0x1fd   : > { %v5658_v0 = vadd.f32 %v5604_v62, %v5324_v45  ;;  %v3918_v1 = vpop.f32.mrb[1].mxu0 }
 0x1fe   : > { %v5659_v3 = vadd.f32 %v3918_v1, %v1768_v46 }
 0x1ff   : > { %v4141_v4 = vadd.f32 %v5658_v0, %v6976_v63 }
 0x200   : > { %v4140_v5 = vadd.f32 %v5659_v3, %v6976_v63  ;;  %v5607_v6 = vpop.f32.mrb[2].mxu0 }
 0x201   : > { %vm4177_vm2 = vcmp.gt.f32.partialorder %v4141_v4, 0.0  ;;  %v4213_v7 = vmul.f32 0.2, %v4141_v4  ;;  %v5660_v8 = vadd.f32 %v5607_v6, %v5327_v47  ;;  %v3928_v9 = vpop.f32.mrb[3].mxu0 }
 0x202   : > { %vm4176_vm3 = vcmp.gt.f32.partialorder %v4140_v5, 0.0  ;;  %v4212_v10 = vmul.f32 0.2, %v4140_v5  ;;  %v5661_v12 = vadd.f32 %v3928_v9, %v1778_v48 }
 0x203   : > { %v4249_v13 = vsel %vm4177_vm2, %v4141_v4, %v4213_v7  ;;  %v4143_v14 = vadd.f32 %v5660_v8, %v6976_v63 }
 0x204   : > { %4285 = vst [vmem:[%s6983_s9 + $0x8] sm:$0xff] %v4249_v13  ;;  %v4248_v15 = vsel %vm4176_vm3, %v4140_v5, %v4212_v10  ;;  %v4142_v16 = vadd.f32 %v5661_v12, %v6976_v63  ;;  %v5610_v17 = vpop.f32.mrb[4].mxu0 }
 0x205   : > { %4284 = vst [vmem:[%s6983_s9] sm:$0xff] %v4248_v15  ;;  %vm4179_vm4 = vcmp.gt.f32.partialorder %v4143_v14, 0.0  ;;  %v4215_v20 = vmul.f32 0.2, %v4143_v14  ;;  %v5662_v21 = vadd.f32 %v5610_v17, %v5330_v49  ;;  %v3938_v22 = vpop.f32.mrb[5].mxu0 }
 0x206   : > { %vm4178_vm5 = vcmp.gt.f32.partialorder %v4142_v16, 0.0  ;;  %v4214_v24 = vmul.f32 0.2, %v4142_v16  ;;  %v5663_v26 = vadd.f32 %v3938_v22, %v1788_v50 }
 0x207   : > { %v4251_v28 = vsel %vm4179_vm4, %v4143_v14, %v4215_v20  ;;  %v4145_v30 = vadd.f32 %v5662_v21, %v6976_v63 }
 0x208   : > { %4287 = vst [vmem:[%s6983_s9 + $0x18] sm:$0xff] %v4251_v28  ;;  %v4250_v32 = vsel %vm4178_vm5, %v4142_v16, %v4214_v24  ;;  %v4144_v34 = vadd.f32 %v5663_v26, %v6976_v63  ;;  %v5613_v36 = vpop.f32.mrb[6].mxu0 }
 0x209   : > { %4286 = vst [vmem:[%s6983_s9 + $0x10] sm:$0xff] %v4250_v32  ;;  %vm4181_vm6 = vcmp.gt.f32.partialorder %v4145_v30, 0.0  ;;  %v4217_v38 = vmul.f32 0.2, %v4145_v30  ;;  %v5664_v40 = vadd.f32 %v5613_v36, %v5333_v51  ;;  %v3948_v42 = vpop.f32.mrb[7].mxu0 }
 0x20a   : > { %vm4180_vm7 = vcmp.gt.f32.partialorder %v4144_v34, 0.0  ;;  %v4216_v19 = vmul.f32 0.2, %v4144_v34  ;;  %v5665_v18 = vadd.f32 %v3948_v42, %v1798_v52 }
 0x20b   : > { %v4253_v23 = vsel %vm4181_vm6, %v4145_v30, %v4217_v38  ;;  %v4147_v25 = vadd.f32 %v5664_v40, %v6976_v63 }
 0x20c   : > { %4289 = vst [vmem:[%s6983_s9 + $0x28] sm:$0xff] %v4253_v23  ;;  %v4252_v44 = vsel %vm4180_vm7, %v4144_v34, %v4216_v19  ;;  %v4146_v27 = vadd.f32 %v5665_v18, %v6976_v63  ;;  %v5616_v29 = vpop.f32.mrb[8].mxu0 }
 0x20d   : > { %4288 = vst [vmem:[%s6983_s9 + $0x20] sm:$0xff] %v4252_v44  ;;  %vm4183_vm8 = vcmp.gt.f32.partialorder %v4147_v25, 0.0  ;;  %v4219_v31 = vmul.f32 0.2, %v4147_v25  ;;  %v5666_v33 = vadd.f32 %v5616_v29, %v6952_v53  ;;  %v3958_v35 = vpop.f32.mrb[9].mxu0 }
 0x20e   : > { %vm4182_vm9 = vcmp.gt.f32.partialorder %v4146_v27, 0.0  ;;  %v4218_v2 = vmul.f32 0.2, %v4146_v27  ;;  %v5667_v37 = vadd.f32 %v3958_v35, %v6954_v54 }
 0x20f   : > { %v4255_v39 = vsel %vm4183_vm8, %v4147_v25, %v4219_v31  ;;  %v4149_v41 = vadd.f32 %v5666_v33, %v6976_v63 }
 0x210   : > { %4291 = vst [vmem:[%s6983_s9 + $0x38] sm:$0xff] %v4255_v39  ;;  %v4254_v43 = vsel %vm4182_vm9, %v4146_v27, %v4218_v2  ;;  %v4148_v45 = vadd.f32 %v5667_v37, %v6976_v63  ;;  %v5619_v46 = vpop.f32.mrb[10].mxu0 }
 0x211   : > { %4290 = vst [vmem:[%s6983_s9 + $0x30] sm:$0xff] %v4254_v43  ;;  %vm4185_vm10 = vcmp.gt.f32.partialorder %v4149_v41, 0.0  ;;  %v4221_v47 = vmul.f32 0.2, %v4149_v41  ;;  %v5668_v48 = vadd.f32 %v5619_v46, %v6956_v55  ;;  %v3968_v49 = vpop.f32.mrb[11].mxu0 }
 0x212   : > { %vm4184_vm11 = vcmp.gt.f32.partialorder %v4148_v45, 0.0  ;;  %v4220_v50 = vmul.f32 0.2, %v4148_v45  ;;  %v5669_v51 = vadd.f32 %v3968_v49, %v6958_v56 }
 0x213   : > { %v4257_v52 = vsel %vm4185_vm10, %v4149_v41, %v4221_v47  ;;  %v4151_v53 = vadd.f32 %v5668_v48, %v6976_v63 }
 0x214   : > { %4293 = vst [vmem:[%s6983_s9 + $0x48] sm:$0xff] %v4257_v52  ;;  %v4256_v54 = vsel %vm4184_vm11, %v4148_v45, %v4220_v50  ;;  %v4150_v62 = vadd.f32 %v5669_v51, %v6976_v63  ;;  %v5622_v0 = vpop.f32.mrb[12].mxu0 }
 0x215   : > { %4292 = vst [vmem:[%s6983_s9 + $0x40] sm:$0xff] %v4256_v54  ;;  %vm4187_vm12 = vcmp.gt.f32.partialorder %v4151_v53, 0.0  ;;  %v4223_v1 = vmul.f32 0.2, %v4151_v53  ;;  %v5670_v55 = vadd.f32 %v5622_v0, %v6960_v57  ;;  %v3978_v3 = vpop.f32.mrb[13].mxu0 }
 0x216   : > { %vm4186_vm13 = vcmp.gt.f32.partialorder %v4150_v62, 0.0  ;;  %v4222_v4 = vmul.f32 0.2, %v4150_v62  ;;  %v5671_v56 = vadd.f32 %v3978_v3, %v6962_v58 }
 0x217   : > { %v4259_v5 = vsel %vm4187_vm12, %v4151_v53, %v4223_v1  ;;  %v4153_v6 = vadd.f32 %v5670_v55, %v6976_v63 }
 0x218   : > { %4295 = vst [vmem:[%s6983_s9 + $0x58] sm:$0xff] %v4259_v5  ;;  %v4258_v7 = vsel %vm4186_vm13, %v4150_v62, %v4222_v4  ;;  %v4152_v8 = vadd.f32 %v5671_v56, %v6976_v63  ;;  %v5625_v9 = vpop.f32.mrb[14].mxu0 }
 0x219   : > { %4294 = vst [vmem:[%s6983_s9 + $0x50] sm:$0xff] %v4258_v7  ;;  %vm4189_vm14 = vcmp.gt.f32.partialorder %v4153_v6, 0.0  ;;  %v4225_v10 = vmul.f32 0.2, %v4153_v6  ;;  %v5672_v57 = vadd.f32 %v5625_v9, %v6964_v59  ;;  %v3988_v12 = vpop.f32.mrb[15].mxu0 }
 0x21a   : > { %vm4188_vm15 = vcmp.gt.f32.partialorder %v4152_v8, 0.0  ;;  %v4224_v13 = vmul.f32 0.2, %v4152_v8  ;;  %v5673_v58 = vadd.f32 %v3988_v12, %v6966_v60 }
 0x21b   : > { %v4261_v14 = vsel %vm4189_vm14, %v4153_v6, %v4225_v10  ;;  %v4155_v15 = vadd.f32 %v5672_v57, %v6976_v63 }
 0x21c   : > { %4297 = vst [vmem:[%s6983_s9 + $0x68] sm:$0xff] %v4261_v14  ;;  %v4260_v16 = vsel %vm4188_vm15, %v4152_v8, %v4224_v13  ;;  %v4154_v17 = vadd.f32 %v5673_v58, %v6976_v63  ;;  %v5407_v20 = vpop.f32.mrb[18].mxu1  ;;  %v5628_v21 = vpop.f32.mrb[16].mxu0 }
 0x21d   : > { %4296 = vst [vmem:[%s6983_s9 + $0x60] sm:$0xff] %v4260_v16  ;;  %vm4191_vm0 = vcmp.gt.f32.partialorder %v4155_v15, 0.0  ;;  %v4227_v22 = vmul.f32 0.2, %v4155_v15  ;;  %v5674_v59 = vadd.f32 %v5628_v21, %v6968_v11  ;;  %v2288_v24 = vpop.f32.mrb[19].mxu1  ;;  %v3998_v26 = vpop.f32.mrb[17].mxu0 }
 0x21e   : > { %vm4190_vm1 = vcmp.gt.f32.partialorder %v4154_v17, 0.0  ;;  %v4226_v60 = vmul.f32 0.2, %v4154_v17  ;;  %v5675_v28 = vadd.f32 %v3998_v26, %v6970_v61 }
 0x21f   : > { %v4263_v30 = vsel %vm4191_vm0, %v4155_v15, %v4227_v22  ;;  %v4157_v32 = vadd.f32 %v5674_v59, %v6976_v63 }
 0x220   : > { %4299 = vst [vmem:[%s6983_s9 + $0x78] sm:$0xff] %v4263_v30  ;;  %v4262_v34 = vsel %vm4190_vm1, %v4154_v17, %v4226_v60  ;;  %v4156_v36 = vadd.f32 %v5675_v28, %v6976_v63  ;;  %v5410_v38 = vpop.f32.mrb[20].mxu1  ;;  %v5631_v40 = vpop.f32.mrb[18].mxu0 }
 0x221   : > { %4298 = vst [vmem:[%s6983_s9 + $0x70] sm:$0xff] %v4262_v34  ;;  %vm4193_vm2 = vcmp.gt.f32.partialorder %v4157_v32, 0.0  ;;  %v4229_v11 = vmul.f32 0.2, %v4157_v32  ;;  %v5676_v42 = vadd.f32 %v5631_v40, %v5407_v20  ;;  %v2298_v19 = vpop.f32.mrb[21].mxu1  ;;  %v4008_v18 = vpop.f32.mrb[19].mxu0 }
 0x222   : > { %vm4192_vm3 = vcmp.gt.f32.partialorder %v4156_v36, 0.0  ;;  %v4228_v23 = vmul.f32 0.2, %v4156_v36  ;;  %v5677_v61 = vadd.f32 %v4008_v18, %v2288_v24 }
 0x223   : > { %v4265_v25 = vsel %vm4193_vm2, %v4157_v32, %v4229_v11  ;;  %v4159_v44 = vadd.f32 %v5676_v42, %v6976_v63 }
 0x224   : > { %4301 = vst [vmem:[%s6983_s9 + $0x88] sm:$0xff] %v4265_v25  ;;  %v4264_v27 = vsel %vm4192_vm3, %v4156_v36, %v4228_v23  ;;  %v4158_v29 = vadd.f32 %v5677_v61, %v6976_v63  ;;  %v5413_v31 = vpop.f32.mrb[22].mxu1  ;;  %v5634_v33 = vpop.f32.mrb[20].mxu0 }
 0x225   : > { %4300 = vst [vmem:[%s6983_s9 + $0x80] sm:$0xff] %v4264_v27  ;;  %vm4195_vm4 = vcmp.gt.f32.partialorder %v4159_v44, 0.0  ;;  %v4231_v35 = vmul.f32 0.2, %v4159_v44  ;;  %v5678_v2 = vadd.f32 %v5634_v33, %v5410_v38  ;;  %v2308_v37 = vpop.f32.mrb[23].mxu1  ;;  %v4018_v39 = vpop.f32.mrb[21].mxu0 }
 0x226   : > { %vm4194_vm5 = vcmp.gt.f32.partialorder %v4158_v29, 0.0  ;;  %v4230_v41 = vmul.f32 0.2, %v4158_v29  ;;  %v5679_v43 = vadd.f32 %v4018_v39, %v2298_v19 }
 0x227   : > { %v4267_v45 = vsel %vm4195_vm4, %v4159_v44, %v4231_v35  ;;  %v4161_v46 = vadd.f32 %v5678_v2, %v6976_v63 }
 0x228   : > { %4303 = vst [vmem:[%s6983_s9 + $0x98] sm:$0xff] %v4267_v45  ;;  %v4266_v47 = vsel %vm4194_vm5, %v4158_v29, %v4230_v41  ;;  %v4160_v48 = vadd.f32 %v5679_v43, %v6976_v63  ;;  %v5416_v49 = vpop.f32.mrb[24].mxu1  ;;  %v5637_v50 = vpop.f32.mrb[22].mxu0 }
 0x229   : > { %4302 = vst [vmem:[%s6983_s9 + $0x90] sm:$0xff] %v4266_v47  ;;  %vm4197_vm6 = vcmp.gt.f32.partialorder %v4161_v46, 0.0  ;;  %v4233_v51 = vmul.f32 0.2, %v4161_v46  ;;  %v5680_v52 = vadd.f32 %v5637_v50, %v5413_v31  ;;  %v2318_v53 = vpop.f32.mrb[25].mxu1  ;;  %v4028_v54 = vpop.f32.mrb[23].mxu0 }
 0x22a   : > { %vm4196_vm7 = vcmp.gt.f32.partialorder %v4160_v48, 0.0  ;;  %v4232_v62 = vmul.f32 0.2, %v4160_v48  ;;  %v5681_v0 = vadd.f32 %v4028_v54, %v2308_v37 }
 0x22b   : > { %v4269_v1 = vsel %vm4197_vm6, %v4161_v46, %v4233_v51  ;;  %v4163_v55 = vadd.f32 %v5680_v52, %v6976_v63 }
 0x22c   : > { %4305 = vst [vmem:[%s6983_s9 + $0xa8] sm:$0xff] %v4269_v1  ;;  %v4268_v3 = vsel %vm4196_vm7, %v4160_v48, %v4232_v62  ;;  %v4162_v4 = vadd.f32 %v5681_v0, %v6976_v63  ;;  %v5419_v56 = vpop.f32.mrb[26].mxu1  ;;  %v5640_v5 = vpop.f32.mrb[24].mxu0 }
 0x22d   : > { %4304 = vst [vmem:[%s6983_s9 + $0xa0] sm:$0xff] %v4268_v3  ;;  %vm4199_vm8 = vcmp.gt.f32.partialorder %v4163_v55, 0.0  ;;  %v4235_v6 = vmul.f32 0.2, %v4163_v55  ;;  %v5682_v7 = vadd.f32 %v5640_v5, %v5416_v49  ;;  %v2328_v8 = vpop.f32.mrb[27].mxu1  ;;  %v4038_v9 = vpop.f32.mrb[25].mxu0 }
 0x22e   : > { %vm4198_vm9 = vcmp.gt.f32.partialorder %v4162_v4, 0.0  ;;  %v4234_v10 = vmul.f32 0.2, %v4162_v4  ;;  %v5683_v57 = vadd.f32 %v4038_v9, %v2318_v53 }
 0x22f   : > { %v4271_v12 = vsel %vm4199_vm8, %v4163_v55, %v4235_v6  ;;  %v4165_v13 = vadd.f32 %v5682_v7, %v6976_v63 }
 0x230   : > { %4307 = vst [vmem:[%s6983_s9 + $0xb8] sm:$0xff] %v4271_v12  ;;  %v4270_v58 = vsel %vm4198_vm9, %v4162_v4, %v4234_v10  ;;  %v4164_v14 = vadd.f32 %v5683_v57, %v6976_v63  ;;  %v5422_v15 = vpop.f32.mrb[28].mxu1  ;;  %v5643_v16 = vpop.f32.mrb[26].mxu0 }
 0x231   : > { %4306 = vst [vmem:[%s6983_s9 + $0xb0] sm:$0xff] %v4270_v58  ;;  %vm4201_vm10 = vcmp.gt.f32.partialorder %v4165_v13, 0.0  ;;  %v4237_v17 = vmul.f32 0.2, %v4165_v13  ;;  %v5684_v20 = vadd.f32 %v5643_v16, %v5419_v56  ;;  %v2338_v21 = vpop.f32.mrb[29].mxu1  ;;  %v4048_v22 = vpop.f32.mrb[27].mxu0 }
 0x232   : > { %vm4200_vm11 = vcmp.gt.f32.partialorder %v4164_v14, 0.0  ;;  %v4236_v59 = vmul.f32 0.2, %v4164_v14  ;;  %v5685_v24 = vadd.f32 %v4048_v22, %v2328_v8 }
 0x233   : > { %v4273_v26 = vsel %vm4201_vm10, %v4165_v13, %v4237_v17  ;;  %v4167_v60 = vadd.f32 %v5684_v20, %v6976_v63 }
 0x234   : > { %4309 = vst [vmem:[%s6983_s9 + $0xc8] sm:$0xff] %v4273_v26  ;;  %v4272_v28 = vsel %vm4200_vm11, %v4164_v14, %v4236_v59  ;;  %v4166_v30 = vadd.f32 %v5685_v24, %v6976_v63  ;;  %v5425_v32 = vpop.f32.mrb[30].mxu1  ;;  %v5646_v34 = vpop.f32.mrb[28].mxu0 }
 0x235   : > { %4308 = vst [vmem:[%s6983_s9 + $0xc0] sm:$0xff] %v4272_v28  ;;  %vm4203_vm12 = vcmp.gt.f32.partialorder %v4167_v60, 0.0  ;;  %v4239_v36 = vmul.f32 0.2, %v4167_v60  ;;  %v5686_v38 = vadd.f32 %v5646_v34, %v5422_v15  ;;  %v2348_v40 = vpop.f32.mrb[31].mxu1  ;;  %v4058_v11 = vpop.f32.mrb[29].mxu0 }
 0x236   : > { %vm4202_vm13 = vcmp.gt.f32.partialorder %v4166_v30, 0.0  ;;  %v4238_v42 = vmul.f32 0.2, %v4166_v30  ;;  %v5687_v19 = vadd.f32 %v4058_v11, %v2338_v21 }
 0x237   : > { %v4275_v18 = vsel %vm4203_vm12, %v4167_v60, %v4239_v36  ;;  %v4169_v23 = vadd.f32 %v5686_v38, %v6976_v63 }
 0x238   : > { %4311 = vst [vmem:[%s6983_s9 + $0xd8] sm:$0xff] %v4275_v18  ;;  %v4274_v61 = vsel %vm4202_vm13, %v4166_v30, %v4238_v42  ;;  %v4168_v25 = vadd.f32 %v5687_v19, %v6976_v63  ;;  %v5428_v44 = vpop.f32.mrb[32].mxu1  ;;  %v5649_v27 = vpop.f32.mrb[30].mxu0 }
 0x239   : > { %4310 = vst [vmem:[%s6983_s9 + $0xd0] sm:$0xff] %v4274_v61  ;;  %vm4205_vm14 = vcmp.gt.f32.partialorder %v4169_v23, 0.0  ;;  %v4241_v29 = vmul.f32 0.2, %v4169_v23  ;;  %v5688_v31 = vadd.f32 %v5649_v27, %v5425_v32  ;;  %v2358_v33 = vpop.f32.mrb[33].mxu1  ;;  %v4068_v35 = vpop.f32.mrb[31].mxu0 }
 0x23a   : > { %vm4204_vm15 = vcmp.gt.f32.partialorder %v4168_v25, 0.0  ;;  %v4240_v2 = vmul.f32 0.2, %v4168_v25  ;;  %v5689_v37 = vadd.f32 %v4068_v35, %v2348_v40 }
 0x23b   : > { %v4277_v39 = vsel %vm4205_vm14, %v4169_v23, %v4241_v29  ;;  %v4171_v41 = vadd.f32 %v5688_v31, %v6976_v63 }
 0x23c   : > { %4313 = vst [vmem:[%s6983_s9 + $0xe8] sm:$0xff] %v4277_v39  ;;  %v4276_v43 = vsel %vm4204_vm15, %v4168_v25, %v4240_v2  ;;  %v4170_v45 = vadd.f32 %v5689_v37, %v6976_v63  ;;  %v5431_v46 = vpop.f32.mrb[34].mxu1  ;;  %v5652_v47 = vpop.f32.mrb[32].mxu0 }
 0x23d   : > { %4312 = vst [vmem:[%s6983_s9 + $0xe0] sm:$0xff] %v4276_v43  ;;  %vm4207_vm0 = vcmp.gt.f32.partialorder %v4171_v41, 0.0  ;;  %v4243_v48 = vmul.f32 0.2, %v4171_v41  ;;  %v5690_v49 = vadd.f32 %v5652_v47, %v5428_v44  ;;  %v2368_v50 = vpop.f32.mrb[35].mxu1  ;;  %v4078_v51 = vpop.f32.mrb[33].mxu0 }
 0x23e   : > { %vm4206_vm1 = vcmp.gt.f32.partialorder %v4170_v45, 0.0  ;;  %v4242_v52 = vmul.f32 0.2, %v4170_v45  ;;  %v5691_v53 = vadd.f32 %v4078_v51, %v2358_v33 }
 0x23f   : > { %v4279_v54 = vsel %vm4207_vm0, %v4171_v41, %v4243_v48  ;;  %v4173_v62 = vadd.f32 %v5690_v49, %v6976_v63 }
 0x240   : > { %4315 = vst [vmem:[%s6983_s9 + $0xf8] sm:$0xff] %v4279_v54  ;;  %v4278_v0 = vsel %vm4206_vm1, %v4170_v45, %v4242_v52  ;;  %v4172_v1 = vadd.f32 %v5691_v53, %v6976_v63  ;;  %v5655_v55 = vpop.f32.mrb[34].mxu0 }
 0x241   : > { %4314 = vst [vmem:[%s6983_s9 + $0xf0] sm:$0xff] %v4278_v0  ;;  %vm4209_vm2 = vcmp.gt.f32.partialorder %v4173_v62, 0.0  ;;  %v4245_v3 = vmul.f32 0.2, %v4173_v62  ;;  %v5692_v4 = vadd.f32 %v5655_v55, %v5431_v46  ;;  %v4088_v56 = vpop.f32.mrb[35].mxu0 }
 0x242   : > { %vm4208_vm3 = vcmp.gt.f32.partialorder %v4172_v1, 0.0  ;;  %v4244_v5 = vmul.f32 0.2, %v4172_v1  ;;  %v5693_v6 = vadd.f32 %v4088_v56, %v2368_v50 }
 0x243   : > { %v4281_v7 = vsel %vm4209_vm2, %v4173_v62, %v4245_v3  ;;  %v4175_v8 = vadd.f32 %v5692_v4, %v6976_v63 }
 0x244   : > { %4317 = vst [vmem:[%s6983_s9 + $0x108] sm:$0xff] %v4281_v7  ;;  %v4280_v9 = vsel %vm4208_vm3, %v4172_v1, %v4244_v5  ;;  %v4174_v10 = vadd.f32 %v5693_v6, %v6976_v63 }
 0x245   : > { %4316 = vst [vmem:[%s6983_s9 + $0x100] sm:$0xff] %v4280_v9  ;;  %vm4211_vm4 = vcmp.gt.f32.partialorder %v4175_v8, 0.0  ;;  %v4247_v57 = vmul.f32 0.2, %v4175_v8 }
 0x246   : > { %vm4210_vm5 = vcmp.gt.f32.partialorder %v4174_v10, 0.0  ;;  %v4246_v12 = vmul.f32 0.2, %v4174_v10 }
 0x247   : > { %v4283_v13 = vsel %vm4211_vm4, %v4175_v8, %v4247_v57 }
 0x248   : > { %4319 = vst [vmem:[%s6983_s9 + $0x118] sm:$0xff] %v4283_v13  ;;  %v4282_v58 = vsel %vm4210_vm5, %v4174_v10, %v4246_v12 }
 0x249   : > { %4318 = vst [vmem:[%s6983_s9 + $0x110] sm:$0xff] %v4282_v58 }
 0x24a   : > { %6019 = shalt.err (!%p6016_p5)
}
 0x24b   : > { %s6020_s29 = scalar_lea.hbm %s7067_s15, 4608  ;;  %s6024_s5 = scalar_lea.hbm %s7124_s3, 9216 }
 0x24c   : > { %p6021_p6 = scmp.ne.s32.totalorder %s7067_s15, %s6020_s29  ;;  %p6025_p10 = scmp.lt.u32.totalorder %s7067_s15, %s7124_s3 }
 0x24d   : > { %p6026_p11 = scmp.lt.u32.totalorder %s6024_s5, %s6020_s29  ;;  %p6028_p13 = scmp.lt.u32.totalorder %s6020_s29, %s7067_s15 }
 0x24e   : > { %p6022_p7 = pnand %p6021_p6, %p6150_p4 }
 0x24f   : > { %p6027_p12 = por %p6026_p11, %p6025_p10 }
 0x250   : > { %p6023_p9 = pneg %p6022_p7 }
 0x251   : > { %p6029_p0 = por %p6028_p13, %p6027_p12 }
 0x253   : > { %p6030_p1 = pnand %p6029_p0, %p6023_p9 }
 0x255   : > { %6033 = shalt.err (!%p6030_p1)
}
 0x256   : > { %s6088_s8 = smov 128   ;;  %s6089_s9 = smov 8  }
 0x257   : > { %5948 = dma.vmem_to_hbm [thread:$0]  (%p6150_p4), %s7069_s11, 4608, %s7067_s15, %s7075_s21, %s6088_s8, %s6088_s8, %s6089_s9  }
 0x258 PF: > { %p5954_p2 = scmp.ge.s32.totalorder %s6084_s17, 2  ;;  %s4350_s10 = sand.u32 1, %s6064_s12  }
 0x259   : > { %s4351_s18 = scalar_lea.sflag [#allocation4], %s4350_s10 }
 0x25a   : > { %p5951_p3 = pnand %p5954_p2, %p6157_p8 }
 0x25c   : > { %6059 = dma.done.wait (!%p5951_p3), %s4351_s18, 4608  }
 0x25d   : > { %6061 = vsyncadd (!%p5951_p3), %s4351_s18, 4294962688  ;;  %s16_s17 = sadd.s32 1, %s6084_s17   ;;  %s7127_s12 = smov %s6068_s13 }
 0x25e   : > { %p13_p5 = scmp.ge.s32.totalorder %s16_s17, 4   ;;  %s7128_s13 = smov %s6072_s14 }
 0x25f   : > { %s7129_s14 = smov %s6163_s25  ;;  %s7130_s15 = smov %s6080_s16 }
 0x260   : > { %s7131_s16 = smov %s7133_s20  ;;  %15 = sbr.rel (!%p13_p5) target bundleno = 4 (0x4), region = 96 }
 0x267   :  { %4356 = vsyncpa [#allocation4], 1 }
 0x268   :  { %4358 = vsyncpa [#allocation4 + $0x1], 1 }

</bundles_post_ra>
